<compile_context>
chip_gen: v5e
topology: v5e:2x2
jax: 0.10.0
libtpu: 0.0.40
codegen_flags: <defaults>
</compile_context>

<pallas_src>
import functools
import math

import jax
import jax.numpy as jnp
from jax.experimental import pallas as pl
from jax.experimental.pallas import tpu as pltpu


# ----------------------------------------------------------------------------
# Fused decoder-layer kernel (one pallas_call per layer, grid over batch)
# ----------------------------------------------------------------------------
def _decoder_layer_kernel(
    x_ref, qp_ref, rin_ref, src_ref, kb_ref,
    wqk_sa_ref, bqk_sa_ref, wv_sa_ref, bv_sa_ref, wo_sa_ref, bo_sa_ref,
    wr_ref, br_ref,
    wq_ca_ref, bq_ca_ref, wkv_ca_ref, bkv_ca_ref, wo_ca_ref, bo_ca_ref,
    wf1_ref, bf1_ref, wf2_ref, bf2_ref, ln_ref,
    o_ref, *, nhead, eps,
):
    f32 = jnp.float32
    x = x_ref[...]                       # (Nq, D)  current decoder output
    qp = qp_ref[...]                     # (Nq, D)  query positional embedding
    src = src_ref[...]                   # (S,  D)  flattened memory
    kbias = kb_ref[...]                  # (1,  S)  additive padding bias
    ln = ln_ref[...]                     # (6,  D)  rows: g1,b1,g2,b2,g3,b3

    D = x.shape[-1]
    dh = D // nhead
    scale = 1.0 / math.sqrt(dh)

    def heads_attn(q, k, v, bias):
        # q: (Nq, D), k/v: (Lk, D); heads are static lane slices of width dh.
        # Output is written lane-dense as (Nq, H*dh) = (Nq, D).
        outs = []
        for h in range(nhead):
            sl = slice(h * dh, (h + 1) * dh)
            s = jax.lax.dot_general(
                q[:, sl], k[:, sl], (((1,), (1,)), ((), ())),
                preferred_element_type=f32) * scale
            if bias is not None:
                s = s + bias
            m = jnp.max(s, axis=-1, keepdims=True)
            e = jnp.exp(s - m)
            denom = jnp.sum(e, axis=-1, keepdims=True)
            oh = jnp.dot(e, v[:, sl], preferred_element_type=f32)
            outs.append(oh * pl.reciprocal(denom, approx=True))
        return jnp.concatenate(outs, axis=-1)

    def add_ln(a, b, g, beta):
        z = a + b
        mu = jnp.mean(z, axis=-1, keepdims=True)
        d = z - mu
        var = jnp.mean(d * d, axis=-1, keepdims=True)
        return d * jax.lax.rsqrt(var + eps) * g + beta

    # ---- 1) self-attention: q = k = x + query_pos, v = x (no padding bias) ----
    qk_in = x + qp
    qk = jnp.dot(qk_in, wqk_sa_ref[...], preferred_element_type=f32) + bqk_sa_ref[...]
    v_sa = jnp.dot(x, wv_sa_ref[...], preferred_element_type=f32) + bv_sa_ref[...]
    a_sa = heads_attn(qk[:, :D], qk[:, D:], v_sa, None)
    sa = jnp.dot(a_sa, wo_sa_ref[...], preferred_element_type=f32) + bo_sa_ref[...]
    x = add_ln(x, sa, ln[0:1, :], ln[1:2, :])

    # ---- 2) cross-attention over the flattened multi-level memory ----------
    # TODO(synk): the original layer uses MSDeformAttn (grid_sample at
    # reference_points_input); here the reference points modulate the query via
    # a fused linear projection and attention is dense over the memory.
    ref_feat = jnp.dot(rin_ref[...], wr_ref[...], preferred_element_type=f32) + br_ref[...]
    q_in = x + qp + ref_feat
    q_ca = jnp.dot(q_in, wq_ca_ref[...], preferred_element_type=f32) + bq_ca_ref[...]
    kv = jnp.dot(src, wkv_ca_ref[...], preferred_element_type=f32) + bkv_ca_ref[...]
    a_ca = heads_attn(q_ca, kv[:, :D], kv[:, D:], kbias)
    ca = jnp.dot(a_ca, wo_ca_ref[...], preferred_element_type=f32) + bo_ca_ref[...]
    x = add_ln(x, ca, ln[2:3, :], ln[3:4, :])

    # ---- 3) FFN (dropout omitted: eval mode) --------------------------------
    h = jnp.maximum(
        jnp.dot(x, wf1_ref[...], preferred_element_type=f32) + bf1_ref[...], 0.0)
    f = jnp.dot(h, wf2_ref[...], preferred_element_type=f32) + bf2_ref[...]
    x = add_ln(x, f, ln[4:5, :], ln[5:6, :])

    o_ref[...] = x.astype(o_ref.dtype)


_WEIGHT_ORDER = (
    "wqk_sa", "bqk_sa", "wv_sa", "bv_sa", "wo_sa", "bo_sa",
    "wr", "br",
    "wq_ca", "bq_ca", "wkv_ca", "bkv_ca", "wo_ca", "bo_ca",
    "wf1", "bf1", "wf2", "bf2", "ln",
)


def fused_decoder_layer(p, x, query_pos, ref_input, src, kbias, nhead, eps=1e-5):
    B, Nq, D = x.shape
    S = src.shape[1]
    Rin = ref_input.shape[-1]

    weights = [p[name] for name in _WEIGHT_ORDER]
    # Full-array blocks with a constant index map: weights stay VMEM-resident
    # across the (parallel) batch grid.
    w_specs = [
        pl.BlockSpec(w.shape, lambda b, _n=w.ndim: (0,) * _n) for w in weights
    ]
    act_specs = [
        pl.BlockSpec((None, Nq, D), lambda b: (b, 0, 0)),    # x
        pl.BlockSpec((None, Nq, D), lambda b: (b, 0, 0)),    # query_pos
        pl.BlockSpec((None, Nq, Rin), lambda b: (b, 0, 0)),  # reference input
        pl.BlockSpec((None, S, D), lambda b: (b, 0, 0)),     # src memory
        pl.BlockSpec((None, 1, S), lambda b: (b, 0, 0)),     # key padding bias
    ]

    return pl.pallas_call(
        functools.partial(_decoder_layer_kernel, nhead=nhead, eps=eps),
        out_shape=jax.ShapeDtypeStruct((B, Nq, D), jnp.float32),
        grid=(B,),
        in_specs=act_specs + w_specs,
        out_specs=pl.BlockSpec((None, Nq, D), lambda b: (b, 0, 0)),
        compiler_params=pltpu.CompilerParams(dimension_semantics=("parallel",)),
    )(x, query_pos, ref_input, src, kbias, *weights)


# ----------------------------------------------------------------------------
# Decoder forward (mirrors LM2CNetDecoder.forward)
# ----------------------------------------------------------------------------
def lm2cnet_decoder_forward(layer_params, nhead, tgt, reference_points, src,
                            src_spatial_shapes, src_level_start_index,
                            src_valid_ratios, query_pos=None, src_padding_mask=None,
                            depth_pos_embed=None, depth_adapt_k=None, mask_depth=None,
                            text_memory=None, text_mask=None, bs=None, textpose=None):
    # TODO(synk): depth_pos_embed / depth_adapt_k / mask_depth / text_memory /
    # text_mask / textpose feed the depth- and text-cross-attention branches of
    # the external decoder layer (not part of the given code); accepted but unused.
    del src_spatial_shapes, src_level_start_index, depth_pos_embed, depth_adapt_k
    del mask_depth, text_memory, text_mask, bs, textpose

    output = tgt
    B, Nq, _ = tgt.shape
    S = src.shape[1]

    if query_pos is None:
        query_pos = jnp.zeros_like(tgt)
    if src_padding_mask is None:
        kbias = jnp.zeros((B, 1, S), jnp.float32)
    else:
        kbias = jnp.where(src_padding_mask, -1e9, 0.0).astype(jnp.float32)[:, None, :]

    # reference_points_input is identical for every layer (bbox_embed is None),
    # so it is hoisted out of the per-layer loop; its (Nq, L*Cr) flattened form
    # feeds the wr projection fused into the per-layer kernel.
    if reference_points.shape[-1] == 6:
        ratios = jnp.concatenate(
            [src_valid_ratios, src_valid_ratios, src_valid_ratios], axis=-1)
    else:
        assert reference_points.shape[-1] == 2
        ratios = src_valid_ratios
    L, Cr = ratios.shape[1], ratios.shape[2]
    ref_input = (reference_points[:, :, None, :] * ratios[:, None, :, :]
                 ).reshape(B, Nq, L * Cr)

    for p in layer_params:
        output = fused_decoder_layer(p, output, query_pos, ref_input, src,
                                     kbias, nhead)
        # bbox_embed / dim_embed / class_embed are None in __init__ and
        # return_intermediate defaults to False -> no refinement / stacking path.
    return output, reference_points


# ----------------------------------------------------------------------------
# Deterministic parameter init (synthetic; no checkpoint load)
# ----------------------------------------------------------------------------
def _init_layer_params(key, d_model, dff, nlvl, ref_dim):
    D = d_model
    ks = jax.random.split(key, 9)
    w = lambda k, s: 0.02 * jax.random.normal(k, s, jnp.float32)
    z = lambda s: jnp.zeros(s, jnp.float32)
    # LayerNorm params packed row-wise: g1, b1, g2, b2, g3, b3.
    ln = jnp.concatenate(
        [jnp.ones((1, D), jnp.float32), jnp.zeros((1, D), jnp.float32)] * 3, axis=0)
    return {
        # self-attention: Q and K weights concatenated -> single (D, 2D) matmul
        "wqk_sa": w(ks[0], (D, 2 * D)), "bqk_sa": z((1, 2 * D)),
        "wv_sa": w(ks[1], (D, D)), "bv_sa": z((1, D)),
        "wo_sa": w(ks[2], (D, D)), "bo_sa": z((1, D)),
        # reference-point modulation (sized by ref_dim so the ==6 branch is
        # shape-consistent when params are built with ref_dim=6)
        "wr": w(ks[3], (nlvl * ref_dim, D)), "br": z((1, D)),
        # cross-attention: K and V weights concatenated -> single (D, 2D) matmul
        "wq_ca": w(ks[4], (D, D)), "bq_ca": z((1, D)),
        "wkv_ca": w(ks[5], (D, 2 * D)), "bkv_ca": z((1, 2 * D)),
        "wo_ca": w(ks[6], (D, D)), "bo_ca": z((1, D)),
        # FFN
        "wf1": w(ks[7], (D, dff)), "bf1": z((1, dff)),
        "wf2": w(ks[8], (dff, D)), "bf2": z((1, D)),
        "ln": ln,
    }


def init_decoder_params(key, num_layers, d_model, dff, nlvl, ref_dim=2):
    keys = jax.random.split(key, num_layers)
    return [_init_layer_params(k, d_model, dff, nlvl, ref_dim) for k in keys]


# ----------------------------------------------------------------------------
if __name__ == "__main__":
    B, Nq, D, H, DFF = 2, 16, 32, 4, 64
    NUM_LAYERS, NLVL = 2, 2
    spatial_shapes = jnp.array([[4, 4], [2, 2]], jnp.int32)
    level_start_index = jnp.array([0, 16], jnp.int32)
    S = int(jnp.sum(spatial_shapes[:, 0] * spatial_shapes[:, 1]))  # 20

    key = jax.random.PRNGKey(0)
    k_par, k_tgt, k_qp, k_src, k_ref, k_vr = jax.random.split(key, 6)

    params = init_decoder_params(k_par, NUM_LAYERS, D, DFF, NLVL, ref_dim=2)

    tgt = jax.random.normal(k_tgt, (B, Nq, D), jnp.float32)
    query_pos = jax.random.normal(k_qp, (B, Nq, D), jnp.float32)
    src = jax.random.normal(k_src, (B, S, D), jnp.float32)
    reference_points = jax.nn.sigmoid(jax.random.normal(k_ref, (B, Nq, 2), jnp.float32))
    src_valid_ratios = jax.random.uniform(k_vr, (B, NLVL, 2), jnp.float32,
                                          minval=0.8, maxval=1.0)
    src_padding_mask = jnp.zeros((B, S), bool).at[1, S - 2:].set(True)

    output, ref_out = lm2cnet_decoder_forward(
        params, H, tgt, reference_points, src,
        spatial_shapes, level_start_index, src_valid_ratios,
        query_pos=query_pos, src_padding_mask=src_padding_mask)

    output = jax.block_until_ready(output)
    ref_out = jax.block_until_ready(ref_out)

    assert output.shape == (B, Nq, D)
    assert ref_out.shape == (B, Nq, 2)
    assert bool(jnp.all(jnp.isfinite(output)))
    print("KERNEL_OK")
</pallas_src>

<mosaic_0001>
module attributes {stable_mosaic.version = 11 : i64} {
  func.func @_decoder_layer_kernel(%arg0: i32, %arg1: memref<1x16x32xf32, #tpu.memory_space<vmem>>, %arg2: memref<1x16x32xf32, #tpu.memory_space<vmem>>, %arg3: memref<1x16x4xf32, #tpu.memory_space<vmem>>, %arg4: memref<1x20x32xf32, #tpu.memory_space<vmem>>, %arg5: memref<1x1x20xf32, #tpu.memory_space<vmem>>, %arg6: memref<32x64xf32, #tpu.memory_space<vmem>>, %arg7: memref<1x64xf32, #tpu.memory_space<vmem>>, %arg8: memref<32x32xf32, #tpu.memory_space<vmem>>, %arg9: memref<1x32xf32, #tpu.memory_space<vmem>>, %arg10: memref<32x32xf32, #tpu.memory_space<vmem>>, %arg11: memref<1x32xf32, #tpu.memory_space<vmem>>, %arg12: memref<4x32xf32, #tpu.memory_space<vmem>>, %arg13: memref<1x32xf32, #tpu.memory_space<vmem>>, %arg14: memref<32x32xf32, #tpu.memory_space<vmem>>, %arg15: memref<1x32xf32, #tpu.memory_space<vmem>>, %arg16: memref<32x64xf32, #tpu.memory_space<vmem>>, %arg17: memref<1x64xf32, #tpu.memory_space<vmem>>, %arg18: memref<32x32xf32, #tpu.memory_space<vmem>>, %arg19: memref<1x32xf32, #tpu.memory_space<vmem>>, %arg20: memref<32x64xf32, #tpu.memory_space<vmem>>, %arg21: memref<1x64xf32, #tpu.memory_space<vmem>>, %arg22: memref<64x32xf32, #tpu.memory_space<vmem>>, %arg23: memref<1x32xf32, #tpu.memory_space<vmem>>, %arg24: memref<6x32xf32, #tpu.memory_space<vmem>>, %arg25: memref<1x16x32xf32, #tpu.memory_space<vmem>>) attributes {dimension_semantics = [#tpu.dimension_semantics<parallel>], iteration_bounds = array<i64: 2>, scalar_prefetch = 0 : i64, scratch_operands = 0 : i64, tpu.core_type = #tpu.core_type<tc>, window_params = [{transform_indices = @transform_0, window_bounds = array<i64: 1, 16, 32>}, {transform_indices = @transform_1, window_bounds = array<i64: 1, 16, 32>}, {transform_indices = @transform_2, window_bounds = array<i64: 1, 16, 4>}, {transform_indices = @transform_3, window_bounds = array<i64: 1, 20, 32>}, {transform_indices = @transform_4, window_bounds = array<i64: 1, 1, 20>}, {pipeline_mode = #tpu.pipeline_mode<synchronous>, transform_indices = @transform_5, window_bounds = array<i64: 32, 64>}, {pipeline_mode = #tpu.pipeline_mode<synchronous>, transform_indices = @transform_6, window_bounds = array<i64: 1, 64>}, {pipeline_mode = #tpu.pipeline_mode<synchronous>, transform_indices = @transform_7, window_bounds = array<i64: 32, 32>}, {pipeline_mode = #tpu.pipeline_mode<synchronous>, transform_indices = @transform_8, window_bounds = array<i64: 1, 32>}, {pipeline_mode = #tpu.pipeline_mode<synchronous>, transform_indices = @transform_9, window_bounds = array<i64: 32, 32>}, {pipeline_mode = #tpu.pipeline_mode<synchronous>, transform_indices = @transform_10, window_bounds = array<i64: 1, 32>}, {pipeline_mode = #tpu.pipeline_mode<synchronous>, transform_indices = @transform_11, window_bounds = array<i64: 4, 32>}, {pipeline_mode = #tpu.pipeline_mode<synchronous>, transform_indices = @transform_12, window_bounds = array<i64: 1, 32>}, {pipeline_mode = #tpu.pipeline_mode<synchronous>, transform_indices = @transform_13, window_bounds = array<i64: 32, 32>}, {pipeline_mode = #tpu.pipeline_mode<synchronous>, transform_indices = @transform_14, window_bounds = array<i64: 1, 32>}, {pipeline_mode = #tpu.pipeline_mode<synchronous>, transform_indices = @transform_15, window_bounds = array<i64: 32, 64>}, {pipeline_mode = #tpu.pipeline_mode<synchronous>, transform_indices = @transform_16, window_bounds = array<i64: 1, 64>}, {pipeline_mode = #tpu.pipeline_mode<synchronous>, transform_indices = @transform_17, window_bounds = array<i64: 32, 32>}, {pipeline_mode = #tpu.pipeline_mode<synchronous>, transform_indices = @transform_18, window_bounds = array<i64: 1, 32>}, {pipeline_mode = #tpu.pipeline_mode<synchronous>, transform_indices = @transform_19, window_bounds = array<i64: 32, 64>}, {pipeline_mode = #tpu.pipeline_mode<synchronous>, transform_indices = @transform_20, window_bounds = array<i64: 1, 64>}, {pipeline_mode = #tpu.pipeline_mode<synchronous>, transform_indices = @transform_21, window_bounds = array<i64: 64, 32>}, {pipeline_mode = #tpu.pipeline_mode<synchronous>, transform_indices = @transform_22, window_bounds = array<i64: 1, 32>}, {pipeline_mode = #tpu.pipeline_mode<synchronous>, transform_indices = @transform_23, window_bounds = array<i64: 6, 32>}, {transform_indices = @transform_24, window_bounds = array<i64: 1, 16, 32>}]} {
    %c0 = arith.constant 0 : index
    %c0_0 = arith.constant 0 : index
    %c0_1 = arith.constant 0 : index
    %0 = vector.load %arg1[%c0, %c0_0, %c0_1] : memref<1x16x32xf32, #tpu.memory_space<vmem>>, vector<1x16x32xf32>
    %1 = vector.shape_cast %0 : vector<1x16x32xf32> to vector<16x32xf32>
    %c0_2 = arith.constant 0 : index
    %c0_3 = arith.constant 0 : index
    %c0_4 = arith.constant 0 : index
    %2 = vector.load %arg2[%c0_2, %c0_3, %c0_4] : memref<1x16x32xf32, #tpu.memory_space<vmem>>, vector<1x16x32xf32>
    %3 = vector.shape_cast %2 : vector<1x16x32xf32> to vector<16x32xf32>
    %c0_5 = arith.constant 0 : index
    %c0_6 = arith.constant 0 : index
    %c0_7 = arith.constant 0 : index
    %4 = vector.load %arg4[%c0_5, %c0_6, %c0_7] : memref<1x20x32xf32, #tpu.memory_space<vmem>>, vector<1x20x32xf32>
    %5 = vector.shape_cast %4 : vector<1x20x32xf32> to vector<20x32xf32>
    %c0_8 = arith.constant 0 : index
    %c0_9 = arith.constant 0 : index
    %c0_10 = arith.constant 0 : index
    %6 = vector.load %arg5[%c0_8, %c0_9, %c0_10] : memref<1x1x20xf32, #tpu.memory_space<vmem>>, vector<1x1x20xf32>
    %7 = vector.shape_cast %6 : vector<1x1x20xf32> to vector<1x20xf32>
    %c0_11 = arith.constant 0 : index
    %c0_12 = arith.constant 0 : index
    %8 = vector.load %arg24[%c0_11, %c0_12] : memref<6x32xf32, #tpu.memory_space<vmem>>, vector<6x32xf32>
    %9 = arith.addf %1, %3 : vector<16x32xf32>
    %c0_13 = arith.constant 0 : index
    %c0_14 = arith.constant 0 : index
    %10 = vector.load %arg6[%c0_13, %c0_14] : memref<32x64xf32, #tpu.memory_space<vmem>>, vector<32x64xf32>
    %cst = arith.constant dense<0.000000e+00> : vector<16x64xf32>
    %11 = tpu.matmul %9, %10, %cst {dimension_numbers = #tpu.dot_dimension_numbers<[1], [0], [0], [1], [0, 0, 1, 1], [], []>} : vector<16x32xf32>, vector<32x64xf32>, vector<16x64xf32> -> vector<16x64xf32>
    %c0_15 = arith.constant 0 : index
    %c0_16 = arith.constant 0 : index
    %12 = vector.load %arg7[%c0_15, %c0_16] : memref<1x64xf32, #tpu.memory_space<vmem>>, vector<1x64xf32>
    %13 = vector.broadcast %12 : vector<1x64xf32> to vector<16x64xf32>
    %14 = arith.addf %11, %13 : vector<16x64xf32>
    %c0_17 = arith.constant 0 : index
    %c0_18 = arith.constant 0 : index
    %15 = vector.load %arg8[%c0_17, %c0_18] : memref<32x32xf32, #tpu.memory_space<vmem>>, vector<32x32xf32>
    %cst_19 = arith.constant dense<0.000000e+00> : vector<16x32xf32>
    %16 = tpu.matmul %1, %15, %cst_19 {dimension_numbers = #tpu.dot_dimension_numbers<[1], [0], [0], [1], [0, 0, 1, 1], [], []>} : vector<16x32xf32>, vector<32x32xf32>, vector<16x32xf32> -> vector<16x32xf32>
    %c0_20 = arith.constant 0 : index
    %c0_21 = arith.constant 0 : index
    %17 = vector.load %arg9[%c0_20, %c0_21] : memref<1x32xf32, #tpu.memory_space<vmem>>, vector<1x32xf32>
    %18 = vector.broadcast %17 : vector<1x32xf32> to vector<16x32xf32>
    %19 = arith.addf %16, %18 : vector<16x32xf32>
    %20 = vector.extract_strided_slice %14 {offsets = [0, 0], sizes = [16, 32], strides = [1, 1]} : vector<16x64xf32> to vector<16x32xf32>
    %21 = vector.extract_strided_slice %14 {offsets = [0, 32], sizes = [16, 32], strides = [1, 1]} : vector<16x64xf32> to vector<16x32xf32>
    %22 = vector.extract_strided_slice %20 {offsets = [0, 0], sizes = [16, 8], strides = [1, 1]} : vector<16x32xf32> to vector<16x8xf32>
    %23 = vector.extract_strided_slice %21 {offsets = [0, 0], sizes = [16, 8], strides = [1, 1]} : vector<16x32xf32> to vector<16x8xf32>
    %cst_22 = arith.constant dense<0.000000e+00> : vector<16x16xf32>
    %24 = tpu.matmul %22, %23, %cst_22 {dimension_numbers = #tpu.dot_dimension_numbers<[1], [1], [0], [0], [0, 0, 1, 0], [], []>} : vector<16x8xf32>, vector<16x8xf32>, vector<16x16xf32> -> vector<16x16xf32>
    %cst_23 = arith.constant 0.353553385 : f32
    %25 = vector.broadcast %cst_23 : f32 to vector<16x16xf32>
    %26 = arith.mulf %24, %25 : vector<16x16xf32>
    %cst_24 = arith.constant dense<0xFF800000> : vector<16xf32>
    %27 = vector.multi_reduction <maximumf>, %26, %cst_24 [1] : vector<16x16xf32> to vector<16xf32>
    %28 = vector.shape_cast %27 : vector<16xf32> to vector<16x1xf32>
    %29 = vector.broadcast %28 : vector<16x1xf32> to vector<16x16xf32>
    %30 = arith.subf %26, %29 : vector<16x16xf32>
    %31 = math.exp %30 : vector<16x16xf32>
    %cst_25 = arith.constant dense<0.000000e+00> : vector<16xf32>
    %32 = vector.multi_reduction <add>, %31, %cst_25 [1] : vector<16x16xf32> to vector<16xf32>
    %33 = vector.shape_cast %32 : vector<16xf32> to vector<16x1xf32>
    %34 = vector.extract_strided_slice %19 {offsets = [0, 0], sizes = [16, 8], strides = [1, 1]} : vector<16x32xf32> to vector<16x8xf32>
    %cst_26 = arith.constant dense<0.000000e+00> : vector<16x8xf32>
    %35 = tpu.matmul %31, %34, %cst_26 {dimension_numbers = #tpu.dot_dimension_numbers<[1], [0], [0], [1], [0, 0, 1, 1], [], []>} : vector<16x16xf32>, vector<16x8xf32>, vector<16x8xf32> -> vector<16x8xf32>
    %36 = tpu.reciprocal %33 {approx = true} : vector<16x1xf32> -> vector<16x1xf32>
    %37 = vector.broadcast %36 : vector<16x1xf32> to vector<16x8xf32>
    %38 = arith.mulf %35, %37 : vector<16x8xf32>
    %39 = vector.extract_strided_slice %20 {offsets = [0, 8], sizes = [16, 8], strides = [1, 1]} : vector<16x32xf32> to vector<16x8xf32>
    %40 = vector.extract_strided_slice %21 {offsets = [0, 8], sizes = [16, 8], strides = [1, 1]} : vector<16x32xf32> to vector<16x8xf32>
    %cst_27 = arith.constant dense<0.000000e+00> : vector<16x16xf32>
    %41 = tpu.matmul %39, %40, %cst_27 {dimension_numbers = #tpu.dot_dimension_numbers<[1], [1], [0], [0], [0, 0, 1, 0], [], []>} : vector<16x8xf32>, vector<16x8xf32>, vector<16x16xf32> -> vector<16x16xf32>
    %cst_28 = arith.constant 0.353553385 : f32
    %42 = vector.broadcast %cst_28 : f32 to vector<16x16xf32>
    %43 = arith.mulf %41, %42 : vector<16x16xf32>
    %cst_29 = arith.constant dense<0xFF800000> : vector<16xf32>
    %44 = vector.multi_reduction <maximumf>, %43, %cst_29 [1] : vector<16x16xf32> to vector<16xf32>
    %45 = vector.shape_cast %44 : vector<16xf32> to vector<16x1xf32>
    %46 = vector.broadcast %45 : vector<16x1xf32> to vector<16x16xf32>
    %47 = arith.subf %43, %46 : vector<16x16xf32>
    %48 = math.exp %47 : vector<16x16xf32>
    %cst_30 = arith.constant dense<0.000000e+00> : vector<16xf32>
    %49 = vector.multi_reduction <add>, %48, %cst_30 [1] : vector<16x16xf32> to vector<16xf32>
    %50 = vector.shape_cast %49 : vector<16xf32> to vector<16x1xf32>
    %51 = vector.extract_strided_slice %19 {offsets = [0, 8], sizes = [16, 8], strides = [1, 1]} : vector<16x32xf32> to vector<16x8xf32>
    %cst_31 = arith.constant dense<0.000000e+00> : vector<16x8xf32>
    %52 = tpu.matmul %48, %51, %cst_31 {dimension_numbers = #tpu.dot_dimension_numbers<[1], [0], [0], [1], [0, 0, 1, 1], [], []>} : vector<16x16xf32>, vector<16x8xf32>, vector<16x8xf32> -> vector<16x8xf32>
    %53 = tpu.reciprocal %50 {approx = true} : vector<16x1xf32> -> vector<16x1xf32>
    %54 = vector.broadcast %53 : vector<16x1xf32> to vector<16x8xf32>
    %55 = arith.mulf %52, %54 : vector<16x8xf32>
    %56 = vector.extract_strided_slice %20 {offsets = [0, 16], sizes = [16, 8], strides = [1, 1]} : vector<16x32xf32> to vector<16x8xf32>
    %57 = vector.extract_strided_slice %21 {offsets = [0, 16], sizes = [16, 8], strides = [1, 1]} : vector<16x32xf32> to vector<16x8xf32>
    %cst_32 = arith.constant dense<0.000000e+00> : vector<16x16xf32>
    %58 = tpu.matmul %56, %57, %cst_32 {dimension_numbers = #tpu.dot_dimension_numbers<[1], [1], [0], [0], [0, 0, 1, 0], [], []>} : vector<16x8xf32>, vector<16x8xf32>, vector<16x16xf32> -> vector<16x16xf32>
    %cst_33 = arith.constant 0.353553385 : f32
    %59 = vector.broadcast %cst_33 : f32 to vector<16x16xf32>
    %60 = arith.mulf %58, %59 : vector<16x16xf32>
    %cst_34 = arith.constant dense<0xFF800000> : vector<16xf32>
    %61 = vector.multi_reduction <maximumf>, %60, %cst_34 [1] : vector<16x16xf32> to vector<16xf32>
    %62 = vector.shape_cast %61 : vector<16xf32> to vector<16x1xf32>
    %63 = vector.broadcast %62 : vector<16x1xf32> to vector<16x16xf32>
    %64 = arith.subf %60, %63 : vector<16x16xf32>
    %65 = math.exp %64 : vector<16x16xf32>
    %cst_35 = arith.constant dense<0.000000e+00> : vector<16xf32>
    %66 = vector.multi_reduction <add>, %65, %cst_35 [1] : vector<16x16xf32> to vector<16xf32>
    %67 = vector.shape_cast %66 : vector<16xf32> to vector<16x1xf32>
    %68 = vector.extract_strided_slice %19 {offsets = [0, 16], sizes = [16, 8], strides = [1, 1]} : vector<16x32xf32> to vector<16x8xf32>
    %cst_36 = arith.constant dense<0.000000e+00> : vector<16x8xf32>
    %69 = tpu.matmul %65, %68, %cst_36 {dimension_numbers = #tpu.dot_dimension_numbers<[1], [0], [0], [1], [0, 0, 1, 1], [], []>} : vector<16x16xf32>, vector<16x8xf32>, vector<16x8xf32> -> vector<16x8xf32>
    %70 = tpu.reciprocal %67 {approx = true} : vector<16x1xf32> -> vector<16x1xf32>
    %71 = vector.broadcast %70 : vector<16x1xf32> to vector<16x8xf32>
    %72 = arith.mulf %69, %71 : vector<16x8xf32>
    %73 = vector.extract_strided_slice %20 {offsets = [0, 24], sizes = [16, 8], strides = [1, 1]} : vector<16x32xf32> to vector<16x8xf32>
    %74 = vector.extract_strided_slice %21 {offsets = [0, 24], sizes = [16, 8], strides = [1, 1]} : vector<16x32xf32> to vector<16x8xf32>
    %cst_37 = arith.constant dense<0.000000e+00> : vector<16x16xf32>
    %75 = tpu.matmul %73, %74, %cst_37 {dimension_numbers = #tpu.dot_dimension_numbers<[1], [1], [0], [0], [0, 0, 1, 0], [], []>} : vector<16x8xf32>, vector<16x8xf32>, vector<16x16xf32> -> vector<16x16xf32>
    %cst_38 = arith.constant 0.353553385 : f32
    %76 = vector.broadcast %cst_38 : f32 to vector<16x16xf32>
    %77 = arith.mulf %75, %76 : vector<16x16xf32>
    %cst_39 = arith.constant dense<0xFF800000> : vector<16xf32>
    %78 = vector.multi_reduction <maximumf>, %77, %cst_39 [1] : vector<16x16xf32> to vector<16xf32>
    %79 = vector.shape_cast %78 : vector<16xf32> to vector<16x1xf32>
    %80 = vector.broadcast %79 : vector<16x1xf32> to vector<16x16xf32>
    %81 = arith.subf %77, %80 : vector<16x16xf32>
    %82 = math.exp %81 : vector<16x16xf32>
    %cst_40 = arith.constant dense<0.000000e+00> : vector<16xf32>
    %83 = vector.multi_reduction <add>, %82, %cst_40 [1] : vector<16x16xf32> to vector<16xf32>
    %84 = vector.shape_cast %83 : vector<16xf32> to vector<16x1xf32>
    %85 = vector.extract_strided_slice %19 {offsets = [0, 24], sizes = [16, 8], strides = [1, 1]} : vector<16x32xf32> to vector<16x8xf32>
    %cst_41 = arith.constant dense<0.000000e+00> : vector<16x8xf32>
    %86 = tpu.matmul %82, %85, %cst_41 {dimension_numbers = #tpu.dot_dimension_numbers<[1], [0], [0], [1], [0, 0, 1, 1], [], []>} : vector<16x16xf32>, vector<16x8xf32>, vector<16x8xf32> -> vector<16x8xf32>
    %87 = tpu.reciprocal %84 {approx = true} : vector<16x1xf32> -> vector<16x1xf32>
    %88 = vector.broadcast %87 : vector<16x1xf32> to vector<16x8xf32>
    %89 = arith.mulf %86, %88 : vector<16x8xf32>
    %90 = tpu.concatenate %38, %55, %72, %89 in 1 : vector<16x8xf32>, vector<16x8xf32>, vector<16x8xf32>, vector<16x8xf32> -> vector<16x32xf32>
    %c0_42 = arith.constant 0 : index
    %c0_43 = arith.constant 0 : index
    %91 = vector.load %arg10[%c0_42, %c0_43] : memref<32x32xf32, #tpu.memory_space<vmem>>, vector<32x32xf32>
    %cst_44 = arith.constant dense<0.000000e+00> : vector<16x32xf32>
    %92 = tpu.matmul %90, %91, %cst_44 {dimension_numbers = #tpu.dot_dimension_numbers<[1], [0], [0], [1], [0, 0, 1, 1], [], []>} : vector<16x32xf32>, vector<32x32xf32>, vector<16x32xf32> -> vector<16x32xf32>
    %c0_45 = arith.constant 0 : index
    %c0_46 = arith.constant 0 : index
    %93 = vector.load %arg11[%c0_45, %c0_46] : memref<1x32xf32, #tpu.memory_space<vmem>>, vector<1x32xf32>
    %94 = vector.broadcast %93 : vector<1x32xf32> to vector<16x32xf32>
    %95 = arith.addf %92, %94 : vector<16x32xf32>
    %96 = vector.extract_strided_slice %8 {offsets = [0, 0], sizes = [1, 32], strides = [1, 1]} : vector<6x32xf32> to vector<1x32xf32>
    %97 = vector.extract_strided_slice %8 {offsets = [1, 0], sizes = [1, 32], strides = [1, 1]} : vector<6x32xf32> to vector<1x32xf32>
    %98 = arith.addf %1, %95 : vector<16x32xf32>
    %cst_47 = arith.constant dense<0.000000e+00> : vector<16xf32>
    %99 = vector.multi_reduction <add>, %98, %cst_47 [1] : vector<16x32xf32> to vector<16xf32>
    %100 = vector.shape_cast %99 : vector<16xf32> to vector<16x1xf32>
    %cst_48 = arith.constant 3.200000e+01 : f32
    %101 = vector.broadcast %cst_48 : f32 to vector<16x1xf32>
    %102 = arith.divf %100, %101 : vector<16x1xf32>
    %103 = vector.broadcast %102 : vector<16x1xf32> to vector<16x32xf32>
    %104 = arith.subf %98, %103 : vector<16x32xf32>
    %105 = arith.mulf %104, %104 : vector<16x32xf32>
    %cst_49 = arith.constant dense<0.000000e+00> : vector<16xf32>
    %106 = vector.multi_reduction <add>, %105, %cst_49 [1] : vector<16x32xf32> to vector<16xf32>
    %107 = vector.shape_cast %106 : vector<16xf32> to vector<16x1xf32>
    %cst_50 = arith.constant 3.200000e+01 : f32
    %108 = vector.broadcast %cst_50 : f32 to vector<16x1xf32>
    %109 = arith.divf %107, %108 : vector<16x1xf32>
    %cst_51 = arith.constant 9.99999974E-6 : f32
    %110 = vector.broadcast %cst_51 : f32 to vector<16x1xf32>
    %111 = arith.addf %109, %110 : vector<16x1xf32>
    %112 = math.rsqrt %111 : vector<16x1xf32>
    %113 = vector.broadcast %112 : vector<16x1xf32> to vector<16x32xf32>
    %114 = arith.mulf %104, %113 : vector<16x32xf32>
    %115 = vector.broadcast %96 : vector<1x32xf32> to vector<16x32xf32>
    %116 = arith.mulf %114, %115 : vector<16x32xf32>
    %117 = vector.broadcast %97 : vector<1x32xf32> to vector<16x32xf32>
    %118 = arith.addf %116, %117 : vector<16x32xf32>
    %c0_52 = arith.constant 0 : index
    %c0_53 = arith.constant 0 : index
    %c0_54 = arith.constant 0 : index
    %119 = vector.load %arg3[%c0_52, %c0_53, %c0_54] : memref<1x16x4xf32, #tpu.memory_space<vmem>>, vector<1x16x4xf32>
    %120 = vector.shape_cast %119 : vector<1x16x4xf32> to vector<16x4xf32>
    %c0_55 = arith.constant 0 : index
    %c0_56 = arith.constant 0 : index
    %121 = vector.load %arg12[%c0_55, %c0_56] : memref<4x32xf32, #tpu.memory_space<vmem>>, vector<4x32xf32>
    %cst_57 = arith.constant dense<0.000000e+00> : vector<16x32xf32>
    %122 = tpu.matmul %120, %121, %cst_57 {dimension_numbers = #tpu.dot_dimension_numbers<[1], [0], [0], [1], [0, 0, 1, 1], [], []>} : vector<16x4xf32>, vector<4x32xf32>, vector<16x32xf32> -> vector<16x32xf32>
    %c0_58 = arith.constant 0 : index
    %c0_59 = arith.constant 0 : index
    %123 = vector.load %arg13[%c0_58, %c0_59] : memref<1x32xf32, #tpu.memory_space<vmem>>, vector<1x32xf32>
    %124 = vector.broadcast %123 : vector<1x32xf32> to vector<16x32xf32>
    %125 = arith.addf %122, %124 : vector<16x32xf32>
    %126 = arith.addf %118, %3 : vector<16x32xf32>
    %127 = arith.addf %126, %125 : vector<16x32xf32>
    %c0_60 = arith.constant 0 : index
    %c0_61 = arith.constant 0 : index
    %128 = vector.load %arg14[%c0_60, %c0_61] : memref<32x32xf32, #tpu.memory_space<vmem>>, vector<32x32xf32>
    %cst_62 = arith.constant dense<0.000000e+00> : vector<16x32xf32>
    %129 = tpu.matmul %127, %128, %cst_62 {dimension_numbers = #tpu.dot_dimension_numbers<[1], [0], [0], [1], [0, 0, 1, 1], [], []>} : vector<16x32xf32>, vector<32x32xf32>, vector<16x32xf32> -> vector<16x32xf32>
    %c0_63 = arith.constant 0 : index
    %c0_64 = arith.constant 0 : index
    %130 = vector.load %arg15[%c0_63, %c0_64] : memref<1x32xf32, #tpu.memory_space<vmem>>, vector<1x32xf32>
    %131 = vector.broadcast %130 : vector<1x32xf32> to vector<16x32xf32>
    %132 = arith.addf %129, %131 : vector<16x32xf32>
    %c0_65 = arith.constant 0 : index
    %c0_66 = arith.constant 0 : index
    %133 = vector.load %arg16[%c0_65, %c0_66] : memref<32x64xf32, #tpu.memory_space<vmem>>, vector<32x64xf32>
    %cst_67 = arith.constant dense<0.000000e+00> : vector<20x64xf32>
    %134 = tpu.matmul %5, %133, %cst_67 {dimension_numbers = #tpu.dot_dimension_numbers<[1], [0], [0], [1], [0, 0, 1, 1], [], []>} : vector<20x32xf32>, vector<32x64xf32>, vector<20x64xf32> -> vector<20x64xf32>
    %c0_68 = arith.constant 0 : index
    %c0_69 = arith.constant 0 : index
    %135 = vector.load %arg17[%c0_68, %c0_69] : memref<1x64xf32, #tpu.memory_space<vmem>>, vector<1x64xf32>
    %136 = vector.broadcast %135 : vector<1x64xf32> to vector<20x64xf32>
    %137 = arith.addf %134, %136 : vector<20x64xf32>
    %138 = vector.extract_strided_slice %137 {offsets = [0, 0], sizes = [20, 32], strides = [1, 1]} : vector<20x64xf32> to vector<20x32xf32>
    %139 = vector.extract_strided_slice %137 {offsets = [0, 32], sizes = [20, 32], strides = [1, 1]} : vector<20x64xf32> to vector<20x32xf32>
    %140 = vector.extract_strided_slice %132 {offsets = [0, 0], sizes = [16, 8], strides = [1, 1]} : vector<16x32xf32> to vector<16x8xf32>
    %141 = vector.extract_strided_slice %138 {offsets = [0, 0], sizes = [20, 8], strides = [1, 1]} : vector<20x32xf32> to vector<20x8xf32>
    %cst_70 = arith.constant dense<0.000000e+00> : vector<16x20xf32>
    %142 = tpu.matmul %140, %141, %cst_70 {dimension_numbers = #tpu.dot_dimension_numbers<[1], [1], [0], [0], [0, 0, 1, 0], [], []>} : vector<16x8xf32>, vector<20x8xf32>, vector<16x20xf32> -> vector<16x20xf32>
    %cst_71 = arith.constant 0.353553385 : f32
    %143 = vector.broadcast %cst_71 : f32 to vector<16x20xf32>
    %144 = arith.mulf %142, %143 : vector<16x20xf32>
    %145 = vector.broadcast %7 : vector<1x20xf32> to vector<16x20xf32>
    %146 = arith.addf %144, %145 : vector<16x20xf32>
    %cst_72 = arith.constant dense<0xFF800000> : vector<16xf32>
    %147 = vector.multi_reduction <maximumf>, %146, %cst_72 [1] : vector<16x20xf32> to vector<16xf32>
    %148 = vector.shape_cast %147 : vector<16xf32> to vector<16x1xf32>
    %149 = vector.broadcast %148 : vector<16x1xf32> to vector<16x20xf32>
    %150 = arith.subf %146, %149 : vector<16x20xf32>
    %151 = math.exp %150 : vector<16x20xf32>
    %cst_73 = arith.constant dense<0.000000e+00> : vector<16xf32>
    %152 = vector.multi_reduction <add>, %151, %cst_73 [1] : vector<16x20xf32> to vector<16xf32>
    %153 = vector.shape_cast %152 : vector<16xf32> to vector<16x1xf32>
    %154 = vector.extract_strided_slice %139 {offsets = [0, 0], sizes = [20, 8], strides = [1, 1]} : vector<20x32xf32> to vector<20x8xf32>
    %cst_74 = arith.constant dense<0.000000e+00> : vector<16x8xf32>
    %155 = tpu.matmul %151, %154, %cst_74 {dimension_numbers = #tpu.dot_dimension_numbers<[1], [0], [0], [1], [0, 0, 1, 1], [], []>} : vector<16x20xf32>, vector<20x8xf32>, vector<16x8xf32> -> vector<16x8xf32>
    %156 = tpu.reciprocal %153 {approx = true} : vector<16x1xf32> -> vector<16x1xf32>
    %157 = vector.broadcast %156 : vector<16x1xf32> to vector<16x8xf32>
    %158 = arith.mulf %155, %157 : vector<16x8xf32>
    %159 = vector.extract_strided_slice %132 {offsets = [0, 8], sizes = [16, 8], strides = [1, 1]} : vector<16x32xf32> to vector<16x8xf32>
    %160 = vector.extract_strided_slice %138 {offsets = [0, 8], sizes = [20, 8], strides = [1, 1]} : vector<20x32xf32> to vector<20x8xf32>
    %cst_75 = arith.constant dense<0.000000e+00> : vector<16x20xf32>
    %161 = tpu.matmul %159, %160, %cst_75 {dimension_numbers = #tpu.dot_dimension_numbers<[1], [1], [0], [0], [0, 0, 1, 0], [], []>} : vector<16x8xf32>, vector<20x8xf32>, vector<16x20xf32> -> vector<16x20xf32>
    %cst_76 = arith.constant 0.353553385 : f32
    %162 = vector.broadcast %cst_76 : f32 to vector<16x20xf32>
    %163 = arith.mulf %161, %162 : vector<16x20xf32>
    %164 = vector.broadcast %7 : vector<1x20xf32> to vector<16x20xf32>
    %165 = arith.addf %163, %164 : vector<16x20xf32>
    %cst_77 = arith.constant dense<0xFF800000> : vector<16xf32>
    %166 = vector.multi_reduction <maximumf>, %165, %cst_77 [1] : vector<16x20xf32> to vector<16xf32>
    %167 = vector.shape_cast %166 : vector<16xf32> to vector<16x1xf32>
    %168 = vector.broadcast %167 : vector<16x1xf32> to vector<16x20xf32>
    %169 = arith.subf %165, %168 : vector<16x20xf32>
    %170 = math.exp %169 : vector<16x20xf32>
    %cst_78 = arith.constant dense<0.000000e+00> : vector<16xf32>
    %171 = vector.multi_reduction <add>, %170, %cst_78 [1] : vector<16x20xf32> to vector<16xf32>
    %172 = vector.shape_cast %171 : vector<16xf32> to vector<16x1xf32>
    %173 = vector.extract_strided_slice %139 {offsets = [0, 8], sizes = [20, 8], strides = [1, 1]} : vector<20x32xf32> to vector<20x8xf32>
    %cst_79 = arith.constant dense<0.000000e+00> : vector<16x8xf32>
    %174 = tpu.matmul %170, %173, %cst_79 {dimension_numbers = #tpu.dot_dimension_numbers<[1], [0], [0], [1], [0, 0, 1, 1], [], []>} : vector<16x20xf32>, vector<20x8xf32>, vector<16x8xf32> -> vector<16x8xf32>
    %175 = tpu.reciprocal %172 {approx = true} : vector<16x1xf32> -> vector<16x1xf32>
    %176 = vector.broadcast %175 : vector<16x1xf32> to vector<16x8xf32>
    %177 = arith.mulf %174, %176 : vector<16x8xf32>
    %178 = vector.extract_strided_slice %132 {offsets = [0, 16], sizes = [16, 8], strides = [1, 1]} : vector<16x32xf32> to vector<16x8xf32>
    %179 = vector.extract_strided_slice %138 {offsets = [0, 16], sizes = [20, 8], strides = [1, 1]} : vector<20x32xf32> to vector<20x8xf32>
    %cst_80 = arith.constant dense<0.000000e+00> : vector<16x20xf32>
    %180 = tpu.matmul %178, %179, %cst_80 {dimension_numbers = #tpu.dot_dimension_numbers<[1], [1], [0], [0], [0, 0, 1, 0], [], []>} : vector<16x8xf32>, vector<20x8xf32>, vector<16x20xf32> -> vector<16x20xf32>
    %cst_81 = arith.constant 0.353553385 : f32
    %181 = vector.broadcast %cst_81 : f32 to vector<16x20xf32>
    %182 = arith.mulf %180, %181 : vector<16x20xf32>
    %183 = vector.broadcast %7 : vector<1x20xf32> to vector<16x20xf32>
    %184 = arith.addf %182, %183 : vector<16x20xf32>
    %cst_82 = arith.constant dense<0xFF800000> : vector<16xf32>
    %185 = vector.multi_reduction <maximumf>, %184, %cst_82 [1] : vector<16x20xf32> to vector<16xf32>
    %186 = vector.shape_cast %185 : vector<16xf32> to vector<16x1xf32>
    %187 = vector.broadcast %186 : vector<16x1xf32> to vector<16x20xf32>
    %188 = arith.subf %184, %187 : vector<16x20xf32>
    %189 = math.exp %188 : vector<16x20xf32>
    %cst_83 = arith.constant dense<0.000000e+00> : vector<16xf32>
    %190 = vector.multi_reduction <add>, %189, %cst_83 [1] : vector<16x20xf32> to vector<16xf32>
    %191 = vector.shape_cast %190 : vector<16xf32> to vector<16x1xf32>
    %192 = vector.extract_strided_slice %139 {offsets = [0, 16], sizes = [20, 8], strides = [1, 1]} : vector<20x32xf32> to vector<20x8xf32>
    %cst_84 = arith.constant dense<0.000000e+00> : vector<16x8xf32>
    %193 = tpu.matmul %189, %192, %cst_84 {dimension_numbers = #tpu.dot_dimension_numbers<[1], [0], [0], [1], [0, 0, 1, 1], [], []>} : vector<16x20xf32>, vector<20x8xf32>, vector<16x8xf32> -> vector<16x8xf32>
    %194 = tpu.reciprocal %191 {approx = true} : vector<16x1xf32> -> vector<16x1xf32>
    %195 = vector.broadcast %194 : vector<16x1xf32> to vector<16x8xf32>
    %196 = arith.mulf %193, %195 : vector<16x8xf32>
    %197 = vector.extract_strided_slice %132 {offsets = [0, 24], sizes = [16, 8], strides = [1, 1]} : vector<16x32xf32> to vector<16x8xf32>
    %198 = vector.extract_strided_slice %138 {offsets = [0, 24], sizes = [20, 8], strides = [1, 1]} : vector<20x32xf32> to vector<20x8xf32>
    %cst_85 = arith.constant dense<0.000000e+00> : vector<16x20xf32>
    %199 = tpu.matmul %197, %198, %cst_85 {dimension_numbers = #tpu.dot_dimension_numbers<[1], [1], [0], [0], [0, 0, 1, 0], [], []>} : vector<16x8xf32>, vector<20x8xf32>, vector<16x20xf32> -> vector<16x20xf32>
    %cst_86 = arith.constant 0.353553385 : f32
    %200 = vector.broadcast %cst_86 : f32 to vector<16x20xf32>
    %201 = arith.mulf %199, %200 : vector<16x20xf32>
    %202 = vector.broadcast %7 : vector<1x20xf32> to vector<16x20xf32>
    %203 = arith.addf %201, %202 : vector<16x20xf32>
    %cst_87 = arith.constant dense<0xFF800000> : vector<16xf32>
    %204 = vector.multi_reduction <maximumf>, %203, %cst_87 [1] : vector<16x20xf32> to vector<16xf32>
    %205 = vector.shape_cast %204 : vector<16xf32> to vector<16x1xf32>
    %206 = vector.broadcast %205 : vector<16x1xf32> to vector<16x20xf32>
    %207 = arith.subf %203, %206 : vector<16x20xf32>
    %208 = math.exp %207 : vector<16x20xf32>
    %cst_88 = arith.constant dense<0.000000e+00> : vector<16xf32>
    %209 = vector.multi_reduction <add>, %208, %cst_88 [1] : vector<16x20xf32> to vector<16xf32>
    %210 = vector.shape_cast %209 : vector<16xf32> to vector<16x1xf32>
    %211 = vector.extract_strided_slice %139 {offsets = [0, 24], sizes = [20, 8], strides = [1, 1]} : vector<20x32xf32> to vector<20x8xf32>
    %cst_89 = arith.constant dense<0.000000e+00> : vector<16x8xf32>
    %212 = tpu.matmul %208, %211, %cst_89 {dimension_numbers = #tpu.dot_dimension_numbers<[1], [0], [0], [1], [0, 0, 1, 1], [], []>} : vector<16x20xf32>, vector<20x8xf32>, vector<16x8xf32> -> vector<16x8xf32>
    %213 = tpu.reciprocal %210 {approx = true} : vector<16x1xf32> -> vector<16x1xf32>
    %214 = vector.broadcast %213 : vector<16x1xf32> to vector<16x8xf32>
    %215 = arith.mulf %212, %214 : vector<16x8xf32>
    %216 = tpu.concatenate %158, %177, %196, %215 in 1 : vector<16x8xf32>, vector<16x8xf32>, vector<16x8xf32>, vector<16x8xf32> -> vector<16x32xf32>
    %c0_90 = arith.constant 0 : index
    %c0_91 = arith.constant 0 : index
    %217 = vector.load %arg18[%c0_90, %c0_91] : memref<32x32xf32, #tpu.memory_space<vmem>>, vector<32x32xf32>
    %cst_92 = arith.constant dense<0.000000e+00> : vector<16x32xf32>
    %218 = tpu.matmul %216, %217, %cst_92 {dimension_numbers = #tpu.dot_dimension_numbers<[1], [0], [0], [1], [0, 0, 1, 1], [], []>} : vector<16x32xf32>, vector<32x32xf32>, vector<16x32xf32> -> vector<16x32xf32>
    %c0_93 = arith.constant 0 : index
    %c0_94 = arith.constant 0 : index
    %219 = vector.load %arg19[%c0_93, %c0_94] : memref<1x32xf32, #tpu.memory_space<vmem>>, vector<1x32xf32>
    %220 = vector.broadcast %219 : vector<1x32xf32> to vector<16x32xf32>
    %221 = arith.addf %218, %220 : vector<16x32xf32>
    %222 = vector.extract_strided_slice %8 {offsets = [2, 0], sizes = [1, 32], strides = [1, 1]} : vector<6x32xf32> to vector<1x32xf32>
    %223 = vector.extract_strided_slice %8 {offsets = [3, 0], sizes = [1, 32], strides = [1, 1]} : vector<6x32xf32> to vector<1x32xf32>
    %224 = arith.addf %118, %221 : vector<16x32xf32>
    %cst_95 = arith.constant dense<0.000000e+00> : vector<16xf32>
    %225 = vector.multi_reduction <add>, %224, %cst_95 [1] : vector<16x32xf32> to vector<16xf32>
    %226 = vector.shape_cast %225 : vector<16xf32> to vector<16x1xf32>
    %cst_96 = arith.constant 3.200000e+01 : f32
    %227 = vector.broadcast %cst_96 : f32 to vector<16x1xf32>
    %228 = arith.divf %226, %227 : vector<16x1xf32>
    %229 = vector.broadcast %228 : vector<16x1xf32> to vector<16x32xf32>
    %230 = arith.subf %224, %229 : vector<16x32xf32>
    %231 = arith.mulf %230, %230 : vector<16x32xf32>
    %cst_97 = arith.constant dense<0.000000e+00> : vector<16xf32>
    %232 = vector.multi_reduction <add>, %231, %cst_97 [1] : vector<16x32xf32> to vector<16xf32>
    %233 = vector.shape_cast %232 : vector<16xf32> to vector<16x1xf32>
    %cst_98 = arith.constant 3.200000e+01 : f32
    %234 = vector.broadcast %cst_98 : f32 to vector<16x1xf32>
    %235 = arith.divf %233, %234 : vector<16x1xf32>
    %cst_99 = arith.constant 9.99999974E-6 : f32
    %236 = vector.broadcast %cst_99 : f32 to vector<16x1xf32>
    %237 = arith.addf %235, %236 : vector<16x1xf32>
    %238 = math.rsqrt %237 : vector<16x1xf32>
    %239 = vector.broadcast %238 : vector<16x1xf32> to vector<16x32xf32>
    %240 = arith.mulf %230, %239 : vector<16x32xf32>
    %241 = vector.broadcast %222 : vector<1x32xf32> to vector<16x32xf32>
    %242 = arith.mulf %240, %241 : vector<16x32xf32>
    %243 = vector.broadcast %223 : vector<1x32xf32> to vector<16x32xf32>
    %244 = arith.addf %242, %243 : vector<16x32xf32>
    %c0_100 = arith.constant 0 : index
    %c0_101 = arith.constant 0 : index
    %245 = vector.load %arg20[%c0_100, %c0_101] : memref<32x64xf32, #tpu.memory_space<vmem>>, vector<32x64xf32>
    %cst_102 = arith.constant dense<0.000000e+00> : vector<16x64xf32>
    %246 = tpu.matmul %244, %245, %cst_102 {dimension_numbers = #tpu.dot_dimension_numbers<[1], [0], [0], [1], [0, 0, 1, 1], [], []>} : vector<16x32xf32>, vector<32x64xf32>, vector<16x64xf32> -> vector<16x64xf32>
    %c0_103 = arith.constant 0 : index
    %c0_104 = arith.constant 0 : index
    %247 = vector.load %arg21[%c0_103, %c0_104] : memref<1x64xf32, #tpu.memory_space<vmem>>, vector<1x64xf32>
    %248 = vector.broadcast %247 : vector<1x64xf32> to vector<16x64xf32>
    %249 = arith.addf %246, %248 : vector<16x64xf32>
    %cst_105 = arith.constant 0.000000e+00 : f32
    %250 = vector.broadcast %cst_105 : f32 to vector<16x64xf32>
    %251 = arith.maximumf %249, %250 : vector<16x64xf32>
    %c0_106 = arith.constant 0 : index
    %c0_107 = arith.constant 0 : index
    %252 = vector.load %arg22[%c0_106, %c0_107] : memref<64x32xf32, #tpu.memory_space<vmem>>, vector<64x32xf32>
    %cst_108 = arith.constant dense<0.000000e+00> : vector<16x32xf32>
    %253 = tpu.matmul %251, %252, %cst_108 {dimension_numbers = #tpu.dot_dimension_numbers<[1], [0], [0], [1], [0, 0, 1, 1], [], []>} : vector<16x64xf32>, vector<64x32xf32>, vector<16x32xf32> -> vector<16x32xf32>
    %c0_109 = arith.constant 0 : index
    %c0_110 = arith.constant 0 : index
    %254 = vector.load %arg23[%c0_109, %c0_110] : memref<1x32xf32, #tpu.memory_space<vmem>>, vector<1x32xf32>
    %255 = vector.broadcast %254 : vector<1x32xf32> to vector<16x32xf32>
    %256 = arith.addf %253, %255 : vector<16x32xf32>
    %257 = vector.extract_strided_slice %8 {offsets = [4, 0], sizes = [1, 32], strides = [1, 1]} : vector<6x32xf32> to vector<1x32xf32>
    %258 = vector.extract_strided_slice %8 {offsets = [5, 0], sizes = [1, 32], strides = [1, 1]} : vector<6x32xf32> to vector<1x32xf32>
    %259 = arith.addf %244, %256 : vector<16x32xf32>
    %cst_111 = arith.constant dense<0.000000e+00> : vector<16xf32>
    %260 = vector.multi_reduction <add>, %259, %cst_111 [1] : vector<16x32xf32> to vector<16xf32>
    %261 = vector.shape_cast %260 : vector<16xf32> to vector<16x1xf32>
    %cst_112 = arith.constant 3.200000e+01 : f32
    %262 = vector.broadcast %cst_112 : f32 to vector<16x1xf32>
    %263 = arith.divf %261, %262 : vector<16x1xf32>
    %264 = vector.broadcast %263 : vector<16x1xf32> to vector<16x32xf32>
    %265 = arith.subf %259, %264 : vector<16x32xf32>
    %266 = arith.mulf %265, %265 : vector<16x32xf32>
    %cst_113 = arith.constant dense<0.000000e+00> : vector<16xf32>
    %267 = vector.multi_reduction <add>, %266, %cst_113 [1] : vector<16x32xf32> to vector<16xf32>
    %268 = vector.shape_cast %267 : vector<16xf32> to vector<16x1xf32>
    %cst_114 = arith.constant 3.200000e+01 : f32
    %269 = vector.broadcast %cst_114 : f32 to vector<16x1xf32>
    %270 = arith.divf %268, %269 : vector<16x1xf32>
    %cst_115 = arith.constant 9.99999974E-6 : f32
    %271 = vector.broadcast %cst_115 : f32 to vector<16x1xf32>
    %272 = arith.addf %270, %271 : vector<16x1xf32>
    %273 = math.rsqrt %272 : vector<16x1xf32>
    %274 = vector.broadcast %273 : vector<16x1xf32> to vector<16x32xf32>
    %275 = arith.mulf %265, %274 : vector<16x32xf32>
    %276 = vector.broadcast %257 : vector<1x32xf32> to vector<16x32xf32>
    %277 = arith.mulf %275, %276 : vector<16x32xf32>
    %278 = vector.broadcast %258 : vector<1x32xf32> to vector<16x32xf32>
    %279 = arith.addf %277, %278 : vector<16x32xf32>
    %c0_116 = arith.constant 0 : index
    %c0_117 = arith.constant 0 : index
    %c0_118 = arith.constant 0 : index
    %280 = vector.load %arg25[%c0_116, %c0_117, %c0_118] : memref<1x16x32xf32, #tpu.memory_space<vmem>>, vector<1x16x32xf32>
    %281 = vector.shape_cast %280 : vector<1x16x32xf32> to vector<16x32xf32>
    %282 = vector.shape_cast %279 : vector<16x32xf32> to vector<1x16x32xf32>
    tpu.vector_store %arg25[%c0_116, %c0_117, %c0_118], %282 {strides = array<i32>} : memref<1x16x32xf32, #tpu.memory_space<vmem>>, vector<1x16x32xf32>,
    return
  }
  func.func @transform_0(%arg0: i32) -> (i32, i32, i32) {
    %c0_i32 = arith.constant 0 : i32
    %c0_i32_0 = arith.constant 0 : i32
    %c0_i32_1 = arith.constant 0 : i32
    return %arg0, %c0_i32, %c0_i32_0 : i32, i32, i32
  }
  func.func @transform_1(%arg0: i32) -> (i32, i32, i32) {
    %c0_i32 = arith.constant 0 : i32
    %c0_i32_0 = arith.constant 0 : i32
    %c0_i32_1 = arith.constant 0 : i32
    return %arg0, %c0_i32, %c0_i32_0 : i32, i32, i32
  }
  func.func @transform_2(%arg0: i32) -> (i32, i32, i32) {
    %c0_i32 = arith.constant 0 : i32
    %c0_i32_0 = arith.constant 0 : i32
    %c0_i32_1 = arith.constant 0 : i32
    return %arg0, %c0_i32, %c0_i32_0 : i32, i32, i32
  }
  func.func @transform_3(%arg0: i32) -> (i32, i32, i32) {
    %c0_i32 = arith.constant 0 : i32
    %c0_i32_0 = arith.constant 0 : i32
    %c0_i32_1 = arith.constant 0 : i32
    return %arg0, %c0_i32, %c0_i32_0 : i32, i32, i32
  }
  func.func @transform_4(%arg0: i32) -> (i32, i32, i32) {
    %c0_i32 = arith.constant 0 : i32
    %c0_i32_0 = arith.constant 0 : i32
    %c0_i32_1 = arith.constant 0 : i32
    return %arg0, %c0_i32, %c0_i32_0 : i32, i32, i32
  }
  func.func @transform_5(%arg0: i32) -> (i32, i32) {
    %c0_i32 = arith.constant 0 : i32
    %c0_i32_0 = arith.constant 0 : i32
    %c0_i32_1 = arith.constant 0 : i32
    return %c0_i32, %c0_i32_0 : i32, i32
  }
  func.func @transform_6(%arg0: i32) -> (i32, i32) {
    %c0_i32 = arith.constant 0 : i32
    %c0_i32_0 = arith.constant 0 : i32
    %c0_i32_1 = arith.constant 0 : i32
    return %c0_i32, %c0_i32_0 : i32, i32
  }
  func.func @transform_7(%arg0: i32) -> (i32, i32) {
    %c0_i32 = arith.constant 0 : i32
    %c0_i32_0 = arith.constant 0 : i32
    %c0_i32_1 = arith.constant 0 : i32
    return %c0_i32, %c0_i32_0 : i32, i32
  }
  func.func @transform_8(%arg0: i32) -> (i32, i32) {
    %c0_i32 = arith.constant 0 : i32
    %c0_i32_0 = arith.constant 0 : i32
    %c0_i32_1 = arith.constant 0 : i32
    return %c0_i32, %c0_i32_0 : i32, i32
  }
  func.func @transform_9(%arg0: i32) -> (i32, i32) {
    %c0_i32 = arith.constant 0 : i32
    %c0_i32_0 = arith.constant 0 : i32
    %c0_i32_1 = arith.constant 0 : i32
    return %c0_i32, %c0_i32_0 : i32, i32
  }
  func.func @transform_10(%arg0: i32) -> (i32, i32) {
    %c0_i32 = arith.constant 0 : i32
    %c0_i32_0 = arith.constant 0 : i32
    %c0_i32_1 = arith.constant 0 : i32
    return %c0_i32, %c0_i32_0 : i32, i32
  }
  func.func @transform_11(%arg0: i32) -> (i32, i32) {
    %c0_i32 = arith.constant 0 : i32
    %c0_i32_0 = arith.constant 0 : i32
    %c0_i32_1 = arith.constant 0 : i32
    return %c0_i32, %c0_i32_0 : i32, i32
  }
  func.func @transform_12(%arg0: i32) -> (i32, i32) {
    %c0_i32 = arith.constant 0 : i32
    %c0_i32_0 = arith.constant 0 : i32
    %c0_i32_1 = arith.constant 0 : i32
    return %c0_i32, %c0_i32_0 : i32, i32
  }
  func.func @transform_13(%arg0: i32) -> (i32, i32) {
    %c0_i32 = arith.constant 0 : i32
    %c0_i32_0 = arith.constant 0 : i32
    %c0_i32_1 = arith.constant 0 : i32
    return %c0_i32, %c0_i32_0 : i32, i32
  }
  func.func @transform_14(%arg0: i32) -> (i32, i32) {
    %c0_i32 = arith.constant 0 : i32
    %c0_i32_0 = arith.constant 0 : i32
    %c0_i32_1 = arith.constant 0 : i32
    return %c0_i32, %c0_i32_0 : i32, i32
  }
  func.func @transform_15(%arg0: i32) -> (i32, i32) {
    %c0_i32 = arith.constant 0 : i32
    %c0_i32_0 = arith.constant 0 : i32
    %c0_i32_1 = arith.constant 0 : i32
    return %c0_i32, %c0_i32_0 : i32, i32
  }
  func.func @transform_16(%arg0: i32) -> (i32, i32) {
    %c0_i32 = arith.constant 0 : i32
    %c0_i32_0 = arith.constant 0 : i32
    %c0_i32_1 = arith.constant 0 : i32
    return %c0_i32, %c0_i32_0 : i32, i32
  }
  func.func @transform_17(%arg0: i32) -> (i32, i32) {
    %c0_i32 = arith.constant 0 : i32
    %c0_i32_0 = arith.constant 0 : i32
    %c0_i32_1 = arith.constant 0 : i32
    return %c0_i32, %c0_i32_0 : i32, i32
  }
  func.func @transform_18(%arg0: i32) -> (i32, i32) {
    %c0_i32 = arith.constant 0 : i32
    %c0_i32_0 = arith.constant 0 : i32
    %c0_i32_1 = arith.constant 0 : i32
    return %c0_i32, %c0_i32_0 : i32, i32
  }
  func.func @transform_19(%arg0: i32) -> (i32, i32) {
    %c0_i32 = arith.constant 0 : i32
    %c0_i32_0 = arith.constant 0 : i32
    %c0_i32_1 = arith.constant 0 : i32
    return %c0_i32, %c0_i32_0 : i32, i32
  }
  func.func @transform_20(%arg0: i32) -> (i32, i32) {
    %c0_i32 = arith.constant 0 : i32
    %c0_i32_0 = arith.constant 0 : i32
    %c0_i32_1 = arith.constant 0 : i32
    return %c0_i32, %c0_i32_0 : i32, i32
  }
  func.func @transform_21(%arg0: i32) -> (i32, i32) {
    %c0_i32 = arith.constant 0 : i32
    %c0_i32_0 = arith.constant 0 : i32
    %c0_i32_1 = arith.constant 0 : i32
    return %c0_i32, %c0_i32_0 : i32, i32
  }
  func.func @transform_22(%arg0: i32) -> (i32, i32) {
    %c0_i32 = arith.constant 0 : i32
    %c0_i32_0 = arith.constant 0 : i32
    %c0_i32_1 = arith.constant 0 : i32
    return %c0_i32, %c0_i32_0 : i32, i32
  }
  func.func @transform_23(%arg0: i32) -> (i32, i32) {
    %c0_i32 = arith.constant 0 : i32
    %c0_i32_0 = arith.constant 0 : i32
    %c0_i32_1 = arith.constant 0 : i32
    return %c0_i32, %c0_i32_0 : i32, i32
  }
  func.func @transform_24(%arg0: i32) -> (i32, i32, i32) {
    %c0_i32 = arith.constant 0 : i32
    %c0_i32_0 = arith.constant 0 : i32
    %c0_i32_1 = arith.constant 0 : i32
    return %arg0, %c0_i32, %c0_i32_0 : i32, i32, i32
  }
}

</mosaic_0001>

<bundles_post_ra>
// kernel: tpu_custom_call.1
= control target key start
LH: loop header
LB: loop body
LE: loop exit
PB: predicated region body
PF: predicated region fallthrough
CT: control target
= control target key end

     0   :  { %s3725_s0 = inlined_call_operand.vmem [shape: f32[2,16,32], index: 0, kind: input, shape index: {}]   ;;  %s3726_s1 = inlined_call_operand.vmem [shape: f32[2,16,32], index: 1, kind: input, shape index: {}]   ;;  %s3727_s2 = inlined_call_operand.vmem [shape: f32[2,16,4], index: 2, kind: input, shape index: {}]   ;;  %s3728_s3 = inlined_call_operand.vmem [shape: f32[2,20,32], index: 3, kind: input, shape index: {}]   ;;  %s3729_s4 = inlined_call_operand.vmem [shape: f32[2,1,20], index: 4, kind: input, shape index: {}]   ;;  %s3730_s5 = inlined_call_operand.vmem [shape: f32[32,64], index: 5, kind: input, shape index: {}]   ;;  %s3731_s6 = inlined_call_operand.vmem [shape: f32[1,64], index: 6, kind: input, shape index: {}]   ;;  %s3732_s7 = inlined_call_operand.vmem [shape: f32[32,32], index: 7, kind: input, shape index: {}]   ;;  %s3733_s8 = inlined_call_operand.vmem [shape: f32[1,32], index: 8, kind: input, shape index: {}]   ;;  %s3734_s9 = inlined_call_operand.hbm [shape: f32[32,32], index: 9, kind: input, shape index: {}]   ;;  %s3735_s10 = inlined_call_operand.vmem [shape: f32[1,32], index: 10, kind: input, shape index: {}]   ;;  %s3736_s11 = inlined_call_operand.vmem [shape: f32[4,32], index: 11, kind: input, shape index: {}]   ;;  %s3737_s12 = inlined_call_operand.vmem [shape: f32[1,32], index: 12, kind: input, shape index: {}]   ;;  %s3738_s13 = inlined_call_operand.hbm [shape: f32[32,32], index: 13, kind: input, shape index: {}]   ;;  %s3739_s14 = inlined_call_operand.vmem [shape: f32[1,32], index: 14, kind: input, shape index: {}]   ;;  %s3740_s15 = inlined_call_operand.hbm [shape: f32[32,64], index: 15, kind: input, shape index: {}]   ;;  %s3741_s16 = inlined_call_operand.vmem [shape: f32[1,64], index: 16, kind: input, shape index: {}]   ;;  %s3742_s17 = inlined_call_operand.hbm [shape: f32[32,32], index: 17, kind: input, shape index: {}]   ;;  %s3743_s18 = inlined_call_operand.vmem [shape: f32[1,32], index: 18, kind: input, shape index: {}]   ;;  %s3744_s19 = inlined_call_operand.hbm [shape: f32[32,64], index: 19, kind: input, shape index: {}]   ;;  %s3745_s20 = inlined_call_operand.vmem [shape: f32[1,64], index: 20, kind: input, shape index: {}]   ;;  %s3746_s21 = inlined_call_operand.vmem [shape: f32[64,32], index: 21, kind: input, shape index: {}]   ;;  %s3747_s22 = inlined_call_operand.vmem [shape: f32[1,32], index: 22, kind: input, shape index: {}]   ;;  %s3748_s23 = inlined_call_operand.vmem [shape: f32[6,32], index: 23, kind: input, shape index: {}]   ;;  %s3749_s24 = inlined_call_operand.hbm [shape: f32[2,16,32], index: 24, kind: output, shape index: {}]  }
   0x1   :  { %3772 = sst [smem:[#allocation24_spill]] %s3725_s0 }
   0x2   :  { %3773 = sst [smem:[#allocation25_spill]] %s3726_s1 }
   0x3   :  { %3774 = sst [smem:[#allocation26_spill]] %s3727_s2 }
   0x4   :  { %3775 = sst [smem:[#allocation27_spill]] %s3728_s3 }
   0x5   :  { %3776 = sst [smem:[#allocation28_spill]] %s3729_s4 }
   0x6   :  { %3777 = sst [smem:[#allocation29_spill]] %s3730_s5 }
   0x7   :  { %3778 = sst [smem:[#allocation30_spill]] %s3731_s6 }
   0x8   :  { %3779 = sst [smem:[#allocation31_spill]] %s3732_s7 }
   0x9   :  { %3780 = sst [smem:[#allocation32_spill]] %s3733_s8 }
   0xa   :  { %3781 = sst [smem:[#allocation33_spill]] %s3734_s9 }
   0xb   :  { %3782 = sst [smem:[#allocation34_spill]] %s3738_s13 }
   0xc   :  { %3783 = sst [smem:[#allocation35_spill]] %s3740_s15 }
   0xd   :  { %3784 = sst [smem:[#allocation36_spill]] %s3742_s17 }
   0xe   :  { %3785 = sst [smem:[#allocation37_spill]] %s3749_s24 }
   0xf   :  { %29 = vsyncpa [#allocation3], 0 }
  0x10   :  { %30 = vsyncpa [#allocation6], 0 }
  0x11   :  { %31 = vsyncpa [#allocation9], 0 }
  0x12   :  { %32 = vsyncpa [#allocation4], 0 }
  0x13   :  { %34 = vsyncpa [#allocation4 + $0x1], 0  ;;  %s3184_s5 = smov 0   ;;  %s3186_s26 = smov 0  }
  0x14   :  { %s3188_s27 = smov 0   ;;  %s3190_s28 = smov 0  }
  0x15 LB: > { %3786 = sst [smem:[#allocation16_spill]] %s3026_s5  ;;  %s3205_s6 = sadd.s32 4294967295, %s3038_s28   ;;  %s3038_s28 = sphi %s3190_s28, %s3821_s28   ;;  %s3034_s27 = sphi %s3188_s27, %s3824_s27   ;;  %s3030_s26 = sphi %s3186_s26, %s3823_s26   ;;  %s3026_s5 = sphi %s3184_s5, %s3822_s5  }
  0x16   : > { %3787 = sst [smem:[#allocation17_spill]] %s3030_s26  ;;  %s2477_s2 = sadd.s32 4294967294, %s3038_s28  }
  0x17   : > { %3788 = sst [smem:[#allocation18_spill]] %s3034_s27  ;;  %s3209_s29 = sadd.s32 1, %s3038_s28  }
  0x18   : > { %3789 = sst [smem:[#allocation19_spill]] %s3038_s28  ;;  %s576_s0 = sadd.s32 1, %s3034_s27 }
  0x19   : > { %3790 = sst [smem:[#allocation20_spill]] %s3209_s29  ;;  %s573_s7 = ssub.s32 %s3038_s28, %s3209_s29 }
  0x1a   : > { %p586_p0 = scmp.ne.s32.totalorder %s3034_s27, %s3030_s26  ;;  %p574_p1 = scmp.eq.s32.totalorder %s573_s7, 0 }
  0x1b   : > { %p587_p2 = scmp.eq.s32.totalorder %s3205_s6, 1  ;;  %p592_p3 = scmp.ne.s32.totalorder %s3030_s26, %s3026_s5 }
  0x1c   : > { %p593_p4 = scmp.eq.s32.totalorder %s2477_s2, 1  ;;  %p2478_p7 = scmp.ge.s32.totalorder %s3038_s28, 1 }
  0x1d   : > { %s3220_s30 = scalar_select %p574_p1, %s3034_s27, %s576_s0  }
  0x1e   : > { %p3222_p5 = por %p587_p2, %p586_p0  ;;  %p3226_p6 = por %p593_p4, %p592_p3 }
  0x1f   : > { %3791 = sst [smem:[#allocation21_spill]] %s3220_s30  ;;  %p600_p8 = scmp.lt.s32.totalorder %s3038_s28, 3 }
  0x20   : > { %s3792_s3 = scalar_select %p3222_p5, 1, 0 }
  0x21   : > { %s3794_s25 = scalar_select %p3226_p6, 1, 0 }
  0x22   : > { %3793 = sst [smem:[#allocation22_spill]] %s3792_s3  ;;  %p2629_p9 = scmp.eq.s32.totalorder %s3205_s6, 0 }
  0x23   : > { %3795 = sst [smem:[#allocation23_spill]] %s3794_s25  ;;  %p3233_p10 = pnand %p2478_p7, %p600_p8 }
  0x24   : > { %s3797_s13 = sld [smem:[#allocation34_spill]]  ;;  %s3040_s29 = smov [#allocation5]  }
  0x25   : > { %p2609_p11 = pneg %p3233_p10  ;;  %s3798_s17 = sld [smem:[#allocation36_spill]] }
  0x26   : > { %s648_s25 = sshll.u32 %s3040_s29, 4  ;;  %s3041_s4 = smov 128   ;;  %s649_s25 = int_to_ptr.vmem [resolvable:$true] %s648_s25 }
  0x27   : > { %p3247_p12 = pnand %p2629_p9, %p2609_p11  ;;  %s3042_s1 = smov 8  }
  0x28   : > { %s3800_s9 = sld [smem:[#allocation33_spill]]  ;;  %s3044_s24 = smov [#allocation2]  }
  0x29   : > { %s3801_s15 = sld [smem:[#allocation35_spill]]  ;;  %s625_s26 = sshll.u32 %s3044_s24, 4  ;;  %s626_s26 = int_to_ptr.vmem [resolvable:$true] %s625_s26 }
  0x2a   : > { %s646_s2 = sshll.u32 %s3797_s13, 4  ;;  %s3043_s13 = smov [#allocation8]   ;;  %s647_s2 = int_to_ptr.hbm [resolvable:$true] %s646_s2 }
  0x2b   : > { %s680_s30 = sshll.u32 %s3798_s17, 4  ;;  %s682_s0 = sshll.u32 %s3043_s13, 4  ;;  %s681_s30 = int_to_ptr.hbm [resolvable:$true] %s680_s30  ;;  %s683_s0 = int_to_ptr.vmem [resolvable:$true] %s682_s0 }
  0x2c   : > { %2615 = dma.hbm_to_vmem [thread:$0]  (!%p3247_p12), %s647_s2, 512, %s649_s25, [#allocation6], %s3041_s4, %s3041_s4, %s3042_s1  }
  0x2d   : > { %2621 = dma.hbm_to_vmem [thread:$0]  (!%p3247_p12), %s681_s30, 512, %s683_s0, [#allocation9], %s3041_s4, %s3041_s4, %s3042_s1  }
  0x2e   : > { %s623_s5 = sshll.u32 %s3800_s9, 4  ;;  %s3045_s13 = smov [#allocation7]   ;;  %s624_s5 = int_to_ptr.hbm [resolvable:$true] %s623_s5 }
  0x2f   : > { %s663_s3 = sshll.u32 %s3801_s15, 4  ;;  %s665_s25 = sshll.u32 %s3045_s13, 4  ;;  %s664_s3 = int_to_ptr.hbm [resolvable:$true] %s663_s3  ;;  %s666_s25 = int_to_ptr.vmem [resolvable:$true] %s665_s25 }
  0x30   : > { %2612 = dma.hbm_to_vmem [thread:$0]  (!%p3247_p12), %s624_s5, 512, %s626_s26, [#allocation3], %s3041_s4, %s3041_s4, %s3042_s1  }
  0x31   : > { %s697_s7 = sshll.u32 %s3744_s19, 4  ;;  %s3046_s30 = smov [#allocation10]   ;;  %s698_s7 = int_to_ptr.hbm [resolvable:$true] %s697_s7 }
  0x32   : > { %2618 = dma.hbm_to_vmem [thread:$0]  (!%p3247_p12), %s664_s3, 512, %s666_s25, [#allocation6], %s3041_s4, %s3041_s4, %s3042_s1  }
  0x33   : > { %s699_s28 = sshll.u32 %s3046_s30, 4  ;;  %765 = sbr.rel (%p3233_p10) target bundleno = 3460 (0xd84), region = 116  ;;  %s700_s28 = int_to_ptr.vmem [resolvable:$true] %s699_s28 }
  0x34   : > { %2624 = dma.hbm_to_vmem [thread:$0]  (!%p3247_p12), %s698_s7, 512, %s700_s28, [#allocation9], %s3041_s4, %s3041_s4, %s3042_s1  }
  0x38   : > { %3009 = dma.done.wait (%p2629_p9), [#allocation3], 512  }
  0x39   : > { %3011 = vsyncadd (%p2629_p9), [#allocation3], 4294966784 }
  0x3a   : > { %3013 = dma.done.wait (%p2629_p9), [#allocation6], 1024  }
  0x3b   : > { %3015 = vsyncadd (%p2629_p9), [#allocation6], 4294966272 }
  0x3c   : > { %3017 = dma.done.wait (%p2629_p9), [#allocation9], 1024  }
  0x3d   : > { %3019 = vsyncadd (%p2629_p9), [#allocation9], 4294966272  ;;  %p870_p13 = scmp.lt.s32.totalorder %s3205_s6, 1  ;;  %s3802_s3 = sld [smem:[#allocation24_spill]]  ;;  %vm912_vm0 = vcmask 261120   ;;  %vm985_vm1 = vcmask 64512  }
  0x3e   : > { %s3803_s0 = sld [smem:[#allocation25_spill]]  ;;  %s3050_s13 = smov 112   ;;  %vm1019_vm2 = vcmask 130048   ;;  %vm1395_vm3 = vcmask 195584   ;;  %vm1508_vm4 = vcmask 1043456   ;;  %vm1501_vm5 = vcmask 31744  }
  0x3f   : > { %s3286_s24 = scalar_select %p870_p13, %s3205_s6, 1  ;;  %vm1664_vm13 = vcmask 162816  }
  0x40   : > { %s3804_s2 = sld [smem:[#allocation29_spill]]  ;;  %s3051_s25 = smov 72  }
  0x41   : > { %s3289_s5 = sshll.u32 %s3286_s24, 4  ;;  %s3805_s9 = sld [smem:[#allocation28_spill]] }
  0x42   : > { %s3806_s1 = sld [smem:[#allocation31_spill]]  ;;  %s3052_s17 = smov 120  }
  0x43   : > { %s874_s8 = scalar_lea.vmem %s3802_s3, %s3289_s5  ;;  %s3807_s4 = sld [smem:[#allocation30_spill]] }
  0x44   : > { %s879_s29 = scalar_lea.vmem %s3803_s0, %s3289_s5  ;;  %v3309_v2 = vld [vmem:[%s874_s8] sm:$0xff]  ;;  %v3334_v11 = vld [vmem:[%s874_s8 + $0x8] sm:$0xff]  ;;  %s3770_s8 = smov 80  }
  0x45   : > { %v3311_v3 = vld [vmem:[%s879_s29] sm:$0xff]  ;;  %v3336_v12 = vld [vmem:[%s879_s29 + $0x8] sm:$0xff]  ;;  %s3048_s29 = smov 88   ;;  %s3049_s0 = smov 96  }
  0x46   : > { %v907_v0 = vld [vmem:[%s3804_s2 + $0x18] sm:$0xff]  ;;  %v906_v1 = vld [vmem:[%s3804_s2 + $0x10] sm:$0xff]  ;;  %v905_v4 = vld [vmem:[%s3804_s2 + $0x8] sm:$0xff]  ;;  %v902_v8 = vadd.f32 %v3311_v3, %v3309_v2  ;;  %v903_v13 = vadd.f32 %v3336_v12, %v3334_v11  ;;  %s3808_s28 = sld [smem:[#allocation32_spill]]  ;;  %s3053_s26 = smov 104  }
  0x47   : > { %931 = vmatpush.msra.mxu0 %v907_v0  ;;  %s892_s15 = scalar_lea.vmem %s3805_s9, %s3286_s24  ;;  %v904_v7 = vld [vmem:[%s3804_s2] sm:$0xff]  ;;  %s3768_s27 = smov 8  }
  0x48   : > { %v945_v5 = vld [vmem:[%s3806_s1 + $0x18] sm:$0xff]  ;;  %v944_v6 = vld [vmem:[%s3806_s1 + $0x10] sm:$0xff]  ;;  %v943_v9 = vld [vmem:[%s3806_s1 + $0x8] sm:$0xff]  ;;  %s3764_s3 = smov 24   ;;  %s3809_s30 = sld [smem:[#allocation26_spill]] }
  0x49   : > { %932 = vmatpush.msra.mxu0 %v906_v1  ;;  %968 = vmatpush.msra.mxu1 %v945_v5  ;;  %v942_v10 = vld [vmem:[%s3806_s1] sm:$0xff]  ;;  %s3810_s7 = sld [smem:[#allocation27_spill]] }
  0x4a   : > { %v2727_v14 = vld [vmem:[%s3807_s4] ss:$0 sm:$0xff]  ;;  %s3766_s4 = smov 16  }
  0x4b   : > { %933 = vmatpush.msra.mxu0 %v905_v4  ;;  %969 = vmatpush.msra.mxu1 %v944_v6 }
  0x4c   : > { %v2728_v20 = vld [vmem:[%s3808_s28] ss:$0 sm:$0xff] }
  0x4d   : > { %934 = vmatpush.msra.mxu0 %v904_v7  ;;  %970 = vmatpush.msra.mxu1 %v943_v9 }
  0x4e   : > { %2499 = vmatmul.msk.f32.vlgmr.msra.gmra.mxu0 %vm912_vm0, %v902_v8 }
  0x4f   : > { %971 = vmatpush.msra.mxu1 %v942_v10 }
  0x50   : > { %2501 = vmatmul.msk.f32.vlgmr.msra.gmra.mxu1 %vm912_vm0, %v3309_v2 }
  0x56   : > { %2500 = vmatmul.msk.f32.gmra.mxu0 %vm912_vm0, %v903_v13 }
  0x58   : > { %2502 = vmatmul.msk.f32.gmra.mxu1 %vm912_vm0, %v3334_v11 }
  0xcb   : > { %v936_v15 = vpop.f32.mrf.mxu0 }
  0xcc   : > { %v937_v16 = vadd.f32 %v2727_v14, %v936_v15 }
  0xcd   : > { %v973_v19 = vpop.f32.mrf.mxu1 }
  0xce   : > { %1175 = vrot.lane.b32.xlu1 %v937_v16, %s3770_s8  ;;  %1075 = vrot.lane.b32.xlu2 %v937_v16, %s3048_s29  ;;  %v974_v22 = vadd.f32 %v2728_v20, %v973_v19 }
  0xd3   : > { %v939_v17 = vpop.f32.mrf.mxu0 }
  0xd4   : > { %v940_v18 = vadd.f32 %v2727_v14, %v939_v17 }
  0xd5   : > { %v976_v21 = vpop.f32.mrf.mxu1 }
  0xd6   : > { %983 = vrot.lane.b32.xlu0 %v940_v18, %s3049_s0  ;;  %1077 = vrot.lane.b32.xlu1 %v940_v18, %s3048_s29  ;;  %v977_v23 = vadd.f32 %v2728_v20, %v976_v21 }
  0xd7   : > { %1171 = vrot.lane.b32.xlu2 %v937_v16, %s3050_s13 }
  0xd8   : > { %2584 = vmatpush.msra.mxu3 %v977_v23  ;;  %1058 = vmatpush.msrb.mxu1 %v977_v23  ;;  %v2691_v38 = vpack.i.bf16 %v974_v22, %v977_v23 }
  0xda   : > { %2585 = vmatpush.msra.mxu3 %v974_v22  ;;  %1059 = vmatpush.msrb.mxu1 %v974_v22 }
  0xde   : > { %981 = vrot.lane.b32.xlu0 %v937_v16, %s3049_s0 }
  0xdf   : > { %1275 = vrot.lane.b32.xlu2 %v940_v18, %s3051_s25 }
  0xe6   : > { %1071 = vrot.lane.b32.xlu0 %v937_v16, %s3052_s17 }
  0xee   : > { %1073 = vrot.lane.b32.xlu0 %v940_v18, %s3052_s17 }
  0xf6   : > { %1177 = vrot.lane.b32.xlu0 %v940_v18, %s3770_s8 }
  0xfe   : > { %1273 = vrot.lane.b32.xlu0 %v937_v16, %s3051_s25 }
 0x106   : > { %1173 = vrot.lane.b32.xlu0 %v940_v18, %s3050_s13 }
 0x128   : > { %v1076_v27 = vpop.permute.xlu2 %1075 }
 0x131   : > { %v1172_v39 = vpop.permute.xlu2 %1171 }
 0x139   : > { %v1276_v40 = vpop.permute.xlu2 %1275 }
 0x140   : > { %v1176_v24 = vpop.permute.xlu1 %1175 }
 0x148   : > { %v984_v25 = vpop.permute.xlu0 %983  ;;  %v1078_v26 = vpop.permute.xlu1 %1077 }
 0x149   : > { %2503 = vmatpush.xpose.msk.msra.mxu2 %vm985_vm1, %v984_v25  ;;  %2509 = vmatpush.xpose.msk.msrb.mxu3 %vm985_vm1, %v1078_v26 }
 0x14d   : > { %2510 = vmatpush.xpose.msk.msrb.mxu3 %vm985_vm1, %v1076_v27 }
 0x150   : > { %v982_v28 = vpop.permute.xlu0 %981 }
 0x151   : > { %2504 = vmatpush.xpose.msk.msra.mxu2 %vm985_vm1, %v982_v28 }
 0x154   : > { %2505 = vmatmul.msk.f32.vlgmr.msra.gmra.mxu2 %vm985_vm1, %v937_v16 }
 0x158   : > { %v1072_v29 = vpop.permute.xlu0 %1071 }
 0x15c   : > { %2506 = vmatmul.msk.f32.gmra.mxu2 %vm985_vm1, %v940_v18 }
 0x160   : > { %v1074_v30 = vpop.permute.xlu0 %1073 }
 0x168   : > { %v1178_v31 = vpop.permute.xlu0 %1177 }
 0x169   : > { %2515 = vmatpush.xpose.msk.msra.mxu1 %vm985_vm1, %v1178_v31 }
 0x16d   : > { %2516 = vmatpush.xpose.msk.msra.mxu1 %vm985_vm1, %v1176_v24 }
 0x170   : > { %v1274_v48 = vpop.permute.xlu0 %1273 }
 0x178   : > { %v1174_v50 = vpop.permute.xlu0 %1173 }
 0x1d7   : > { %v1011_v32 = vpop.f32.mrf.mxu2 }
 0x1d8   : > { %v1017_v33 = vmul.f32 0.35355338, %v1011_v32 }
 0x1da   : > { %v1020_v34 = vsel %vm1019_vm2, %v1017_v33, -inf }
 0x1db   : > { %1021 = vmax.xlane.f32.xlu2 %v1020_v34 }
 0x1df   : > { %v1014_v35 = vpop.f32.mrf.mxu2 }
 0x1e0   : > { %v1018_v36 = vmul.f32 0.35355338, %v1014_v35 }
 0x1e2   : > { %v1023_v37 = vsel %vm1019_vm2, %v1018_v36, -inf }
 0x1e3   : > { %1024 = vmax.xlane.f32.xlu1 %v1023_v37 }
 0x1f3   : > { %1271 = vrot.lane.b32.xlu2 %v940_v18, %s3053_s26 }
 0x1fb   : > { %2692 = vrot.lane.b32.xlu2 %v2691_v38, %s3052_s17 }
 0x1fc   : > { %1269 = vrot.lane.b32.xlu1 %v937_v16, %s3053_s26 }
 0x24e   : > { %v1022_v41 = vpop.xlane.xlu2 %1021 }
 0x24f   : > { %v1026_v42 = vsub.f32 %v1017_v33, %v1022_v41 }
 0x251   : > { %v1028_v43 = vmul.f32 1.442695, %v1026_v42 }
 0x253   : > { %2736 = vpow2.f32 %v1028_v43 }
 0x256   : > { %v1025_v44 = vpop.xlane.xlu1 %1024  ;;  %v1272_v52 = vpop.permute.xlu2 %1271 }
 0x257   : > { %v1027_v45 = vsub.f32 %v1018_v36, %v1025_v44 }
 0x259   : > { %v3376_v46 = vpop.eup %2736  ;;  %v1030_v47 = vmul.f32 1.442695, %v1027_v45 }
 0x25a   : > { %2507 = vmatmul.msk.f32.vlgmr.msrb.gmra.mxu1 %vm1019_vm2, %v3376_v46  ;;  %v1032_v45 = vsel %vm1019_vm2, %v3376_v46, 0.0 }
 0x25b   : > { %2738 = vpow2.f32 %v1030_v47 }
 0x25e   : > { %v2693_v53 = vpop.permute.xlu2 %2692 }
 0x25f   : > { %v2694_v54 = vunpack.i.l.bf16 %v2693_v53  ;;  %v2695_v55 = vunpack.i.h.bf16 %v2693_v53 }
 0x261   : > { %v3380_v49 = vpop.eup %2738  ;;  %1158 = vmatpush.msrb.mxu0 %v2694_v54 }
 0x262   : > { %2508 = vmatmul.msk.f32.vlgmr.msra.gmra.mxu3 %vm1019_vm2, %v3380_v49  ;;  %2517 = vmatmul.msk.f32.vlgmr.msra.gmra.mxu1 %vm985_vm1, %v1172_v39 }
 0x263   : > { %2521 = vmatpush.xpose.msk.msra.mxu3 %vm985_vm1, %v1276_v40  ;;  %1159 = vmatpush.msrb.mxu0 %v2695_v55 }
 0x267   : > { %2522 = vmatpush.xpose.msk.msra.mxu3 %vm985_vm1, %v1274_v48 }
 0x26a   : > { %2511 = vmatmul.msk.f32.vlgmr.msrb.gmra.mxu3 %vm985_vm1, %v1072_v29  ;;  %2518 = vmatmul.msk.f32.gmra.mxu1 %vm985_vm1, %v1174_v50  ;;  %v1035_v50 = vsel %vm1019_vm2, %v3380_v49, 0.0 }
 0x26e   : > { %v1270_v51 = vpop.permute.xlu1 %1269 }
 0x272   : > { %2512 = vmatmul.msk.f32.gmra.mxu3 %vm985_vm1, %v1074_v30 }
 0x27a   : > { %2523 = vmatmul.msk.f32.vlgmr.msra.gmra.mxu3 %vm985_vm1, %v1270_v51 }
 0x282   : > { %2524 = vmatmul.msk.f32.gmra.mxu3 %vm985_vm1, %v1272_v52 }
 0x2d7   : > { %v3392_v56 = vpop.f32.mrf.mxu1 }
 0x2df   : > { %v1204_v57 = vpop.f32.mrf.mxu1 }
 0x2e0   : > { %v1210_v58 = vmul.f32 0.35355338, %v1204_v57 }
 0x2e2   : > { %v1212_v59 = vsel %vm1019_vm2, %v1210_v58, -inf }
 0x2e3   : > { %1213 = vmax.xlane.f32.xlu2 %v1212_v59 }
 0x2e5   : > { %v3395_v60 = vpop.f32.mrf.mxu3 }
 0x2e7   : > { %v1207_v61 = vpop.f32.mrf.mxu1 }
 0x2e8   : > { %v1211_v62 = vmul.f32 0.35355338, %v1207_v61 }
 0x2ea   : > { %v1215_v63 = vsel %vm1019_vm2, %v1211_v62, -inf }
 0x2eb   : > { %1216 = vmax.xlane.f32.xlu0 %v1215_v63 }
 0x2ed   : > { %v1104_v0 = vpop.f32.mrf.mxu3 }
 0x2ee   : > { %v1110_v1 = vmul.f32 0.35355338, %v1104_v0 }
 0x2f0   : > { %v1112_v4 = vsel %vm1019_vm2, %v1110_v1, -inf }
 0x2f1   : > { %1113 = vmax.xlane.f32.xlu1 %v1112_v4 }
 0x2f5   : > { %v1107_v5 = vpop.f32.mrf.mxu3 }
 0x2f6   : > { %v1111_v6 = vmul.f32 0.35355338, %v1107_v5 }
 0x2f8   : > { %v1115_v7 = vsel %vm1019_vm2, %v1111_v6, -inf }
 0x2f9   : > { %1116 = vmax.xlane.f32.xlu0 %v1115_v7 }
 0x2fd   : > { %v1302_v8 = vpop.f32.mrf.mxu3 }
 0x2fe   : > { %v1308_v9 = vmul.f32 0.35355338, %v1302_v8 }
 0x300   : > { %v1310_v10 = vsel %vm1019_vm2, %v1308_v9, -inf }
 0x301   : > { %1311 = vmax.xlane.f32.xlu1 %v1310_v10 }
 0x305   : > { %v1305_v13 = vpop.f32.mrf.mxu3 }
 0x306   : > { %v1309_v14 = vmul.f32 0.35355338, %v1305_v13 }
 0x308   : > { %v1313_v15 = vsel %vm1019_vm2, %v1309_v14, -inf }
 0x309   : > { %1314 = vmax.xlane.f32.xlu2 %v1313_v15 }
 0x30d   : > { %2702 = vrot.lane.b32.xlu0 %v2691_v38, %s3053_s26 }
 0x31a   : > { %2697 = vrot.lane.b32.xlu1 %v2691_v38, %s3050_s13 }
 0x356   : > { %v1214_v16 = vpop.xlane.xlu2 %1213 }
 0x357   : > { %v1218_v17 = vsub.f32 %v1210_v58, %v1214_v16 }
 0x359   : > { %v1220_v18 = vmul.f32 1.442695, %v1218_v17 }
 0x35b   : > { %2740 = vpow2.f32 %v1220_v18 }
 0x35e   : > { %v1217_v21 = vpop.xlane.xlu0 %1216 }
 0x35f   : > { %v1219_v24 = vsub.f32 %v1211_v62, %v1217_v21 }
 0x361   : > { %v2741_v19 = vpop.eup %2740  ;;  %v1222_v26 = vmul.f32 1.442695, %v1219_v24  ;;  %v1399_v24 = vld [vmem:[#allocation2 + $0x8] sm:$0xff] }
 0x362   : > { %v1224_v20 = vsel %vm1019_vm2, %v2741_v19, 0.0 }
 0x363   : > { %1225 = vadd.xlane.f32.xlu2 %v1224_v20 }
 0x364   : > { %v1114_v22 = vpop.xlane.xlu1 %1113 }
 0x365   : > { %v1118_v23 = vsub.f32 %v1110_v1, %v1114_v22  ;;  %v1401_v22 = vld [vmem:[#allocation2 + $0x18] sm:$0xff] }
 0x366   : > { %1424 = vmatpush.msrb.mxu1 %v1401_v22 }
 0x367   : > { %v1120_v25 = vmul.f32 1.442695, %v1118_v23  ;;  %v1400_v23 = vld [vmem:[#allocation2 + $0x10] sm:$0xff] }
 0x368   : > { %1425 = vmatpush.msrb.mxu1 %v1400_v23 }
 0x369   : > { %2742 = vpow2.f32 %v1120_v25  ;;  %v1398_v25 = vld [vmem:[#allocation2] sm:$0xff] }
 0x36a   : > { %2744 = vpow2.f32 %v1222_v26  ;;  %1426 = vmatpush.msrb.mxu1 %v1399_v24 }
 0x36c   : > { %v1117_v27 = vpop.xlane.xlu0 %1116  ;;  %1427 = vmatpush.msrb.mxu1 %v1398_v25 }
 0x36d   : > { %v1119_v28 = vsub.f32 %v1111_v6, %v1117_v27 }
 0x36f   : > { %v2743_v29 = vpop.eup %2742  ;;  %v1122_v30 = vmul.f32 1.442695, %v1119_v28 }
 0x370   : > { %2513 = vmatmul.msk.f32.vlgmr.msrb.gmra.mxu0 %vm1019_vm2, %v2743_v29  ;;  %v1124_v31 = vsel %vm1019_vm2, %v2743_v29, 0.0  ;;  %v2745_v33 = vpop.eup %2744 }
 0x371   : > { %2746 = vpow2.f32 %v1122_v30  ;;  %1125 = vadd.xlane.f32.xlu2 %v1124_v31  ;;  %v1227_v37 = vsel %vm1019_vm2, %v2745_v33, 0.0 }
 0x374   : > { %v1312_v32 = vpop.xlane.xlu1 %1311 }
 0x375   : > { %v1316_v34 = vsub.f32 %v1308_v9, %v1312_v32 }
 0x377   : > { %v2747_v35 = vpop.eup %2746  ;;  %v1318_v36 = vmul.f32 1.442695, %v1316_v34 }
 0x378   : > { %2514 = vmatmul.msk.f32.gmra.mxu0 %vm1019_vm2, %v2747_v35  ;;  %v1127_v38 = vsel %vm1019_vm2, %v2747_v35, 0.0 }
 0x379   : > { %2748 = vpow2.f32 %v1318_v36  ;;  %1228 = vadd.xlane.f32.xlu2 %v1227_v37  ;;  %1128 = vadd.xlane.f32.xlu0 %v1127_v38 }
 0x37c   : > { %v1315_v39 = vpop.xlane.xlu2 %1314 }
 0x37d   : > { %v1317_v40 = vsub.f32 %v1309_v14, %v1315_v39 }
 0x37f   : > { %v2749_v41 = vpop.eup %2748  ;;  %v2703_v42 = vpop.permute.xlu0 %2702  ;;  %v1320_v47 = vmul.f32 1.442695, %v1317_v40 }
 0x380   : > { %v2704_v43 = vunpack.i.l.bf16 %v2703_v42  ;;  %v1322_v44 = vsel %vm1019_vm2, %v2749_v41, 0.0  ;;  %v2705_v48 = vunpack.i.h.bf16 %v2703_v42 }
 0x381   : > { %1323 = vadd.xlane.f32.xlu1 %v1322_v44  ;;  %1033 = vadd.xlane.f32.xlu2 %v1032_v45  ;;  %2750 = vpow2.f32 %v1320_v47 }
 0x382   : > { %1354 = vmatpush.msra.mxu0 %v2704_v43 }
 0x384   : > { %1355 = vmatpush.msra.mxu0 %v2705_v48 }
 0x385   : > { %2525 = vmatmul.msk.f32.vlgmr.msra.gmra.mxu0 %vm1019_vm2, %v2749_v41  ;;  %v2729_v41 = vld [vmem:[%s3735_s10] ss:$0 sm:$0xff] }
 0x387   : > { %v2751_v51 = vpop.eup %2750 }
 0x388   : > { %v1325_v54 = vsel %vm1019_vm2, %v2751_v51, 0.0 }
 0x389   : > { %1036 = vadd.xlane.f32.xlu2 %v1035_v50 }
 0x38c   : > { %v2698_v52 = vpop.permute.xlu1 %2697 }
 0x38d   : > { %2526 = vmatmul.msk.f32.gmra.mxu0 %vm1019_vm2, %v2751_v51  ;;  %v2699_v53 = vunpack.i.l.bf16 %v2698_v52  ;;  %v2700_v46 = vunpack.i.h.bf16 %v2698_v52  ;;  %v3057_v51 = vmov 32.0  }
 0x38f   : > { %1256 = vmatpush.msrb.mxu2 %v2699_v53 }
 0x391   : > { %1257 = vmatpush.msrb.mxu2 %v2700_v46  ;;  %1326 = vadd.xlane.f32.xlu2 %v1325_v54  ;;  %v1578_v54 = vld [vmem:[#allocation7 + $0x10] sm:$0xff] }
 0x392   : > { %2519 = vmatmul.msk.f32.vlgmr.msrb.gmra.mxu2 %vm1019_vm2, %v2741_v19 }
 0x39a   : > { %2520 = vmatmul.msk.f32.gmra.mxu2 %vm1019_vm2, %v2745_v33 }
 0x3d6   : > { %v1226_v55 = vpop.xlane.xlu2 %1225 }
 0x3e4   : > { %v1126_v57 = vpop.xlane.xlu2 %1125 }
 0x3e5   : > { %2752 = vrcp.f32 %v1126_v57  ;;  %v1577_v57 = vld [vmem:[#allocation7 + $0x8] sm:$0xff] }
 0x3eb   : > { %v2753_v58 = vpop.eup %2752 }
 0x3ec   : > { %v1129_v49 = vpop.xlane.xlu0 %1128  ;;  %v1229_v62 = vpop.xlane.xlu2 %1228 }
 0x3ed   : > { %v1161_v59 = vpop.f32.mrf.mxu0  ;;  %2754 = vrcp.f32 %v1129_v49  ;;  %v1576_v49 = vld [vmem:[#allocation7] sm:$0xff] }
 0x3ee   : > { %v1169_v61 = vmul.f32 %v2753_v58, %v1161_v59 }
 0x3f0   : > { %1369 = vrot.lane.b32.xlu2 %v1169_v61, %s3768_s27 }
 0x3f3   : > { %v2755_v63 = vpop.eup %2754 }
 0x3f4   : > { %v1324_v4 = vpop.xlane.xlu1 %1323  ;;  %v1034_v5 = vpop.xlane.xlu2 %1033 }
 0x3f5   : > { %v1164_v0 = vpop.f32.mrf.mxu0  ;;  %2756 = vrcp.f32 %v1324_v4 }
 0x3f6   : > { %v1170_v1 = vmul.f32 %v2755_v63, %v1164_v0  ;;  %2758 = vrcp.f32 %v1226_v55 }
 0x3f8   : > { %1371 = vrot.lane.b32.xlu2 %v1170_v1, %s3768_s27 }
 0x3fb   : > { %v2757_v6 = vpop.eup %2756 }
 0x3fc   : > { %v1037_v9 = vpop.xlane.xlu2 %1036  ;;  %v2759_v13 = vpop.eup %2758 }
 0x402   : > { %v1357_v7 = vpop.f32.mrf.mxu0 }
 0x403   : > { %v1365_v8 = vmul.f32 %v2757_v6, %v1357_v7 }
 0x404   : > { %v1327_v10 = vpop.xlane.xlu2 %1326 }
 0x405   : > { %1385 = vrot.lane.b32.xlu0 %v1365_v8, %s3764_s3  ;;  %2760 = vrcp.f32 %v1327_v10 }
 0x406   : > { %2762 = vrcp.f32 %v1229_v62 }
 0x407   : > { %2764 = vrcp.f32 %v1034_v5 }
 0x408   : > { %2766 = vrcp.f32 %v1037_v9 }
 0x409   : > { %2768 = vrcp.f32 %v3057_v51 }
 0x40a   : > { %v1360_v17 = vpop.f32.mrf.mxu0 }
 0x40b   : > { %v2761_v16 = vpop.eup %2760 }
 0x40c   : > { %v2763_v18 = vpop.eup %2762  ;;  %v1366_v20 = vmul.f32 %v2761_v16, %v1360_v17  ;;  %v1542_v16 = vld [vmem:[#allocation5 + $0x18] sm:$0xff]  ;;  %v1541_v17 = vld [vmem:[#allocation5 + $0x10] sm:$0xff] }
 0x40d   : > { %v2765_v26 = vpop.eup %2764  ;;  %1565 = vmatpush.msrb.mxu3 %v1542_v16 }
 0x40e   : > { %v1069_v28 = vmul.f32 %v2765_v26, %v3392_v56  ;;  %v2767_v34 = vpop.eup %2766 }
 0x40f   : > { %v1070_v36 = vmul.f32 %v2767_v34, %v3395_v60  ;;  %v2769_v52 = vpop.eup %2768  ;;  %1566 = vmatpush.msrb.mxu3 %v1541_v17  ;;  %v3478_v34 = vld [vmem:[%s3748_s23] sm:$0x3f] }
 0x410   : > { %v1444_v53 = vmul.f32 32.0, %v2769_v52  ;;  %vm1448_vm6 = vweird.f32 %v2769_v52 }
 0x412   : > { %v1445_v55 = vsub.f32 1.0, %v1444_v53 }
 0x414   : > { %v1446_v58 = vmul.f32 %v2769_v52, %v1445_v55 }
 0x415   : > { %v1259_v14 = vpop.f32.mrf.mxu2 }
 0x416   : > { %v1267_v15 = vmul.f32 %v2759_v13, %v1259_v14  ;;  %v1447_v62 = vadd.f32 %v2769_v52, %v1446_v58 }
 0x418   : > { %1377 = vrot.lane.b32.xlu1 %v1267_v15, %s3766_s4  ;;  %v3458_v63 = vsel %vm1448_vm6, %v2769_v52, %v1447_v62 }
 0x41d   : > { %v1262_v19 = vpop.f32.mrf.mxu2 }
 0x41e   : > { %v1268_v21 = vmul.f32 %v2763_v18, %v1262_v19  ;;  %v1540_v18 = vld [vmem:[#allocation5 + $0x8] sm:$0xff]  ;;  %v1539_v19 = vld [vmem:[#allocation5] sm:$0xff] }
 0x41f   : > { %1567 = vmatpush.msrb.mxu3 %v1540_v18 }
 0x420   : > { %1379 = vrot.lane.b32.xlu0 %v1268_v21, %s3766_s4  ;;  %1387 = vrot.lane.b32.xlu1 %v1366_v20, %s3764_s3  ;;  %s884_s3 = scalar_lea.vmem %s3809_s30, %s3289_s5  ;;  %s2586_s4 = smul.u32 24, %s3286_s24 }
 0x421   : > { %v1494_v46 = vld [vmem:[%s884_s3] sm:$0xff]  ;;  %v1495_v61 = vld [vmem:[%s884_s3 + $0x8] sm:$0xff]  ;;  %1568 = vmatpush.msrb.mxu3 %v1539_v19  ;;  %s3812_s24 = smov 8   ;;  %s3815_s5 = sld [smem:[#allocation17_spill]] }
 0x422   : > { %s889_s30 = scalar_lea.vmem %s3810_s7, %s2586_s4 }
 0x423   : > { %v897_v59 = vld [vmem:[%s889_s30] sm:$0xff]  ;;  %v898_v0 = vld [vmem:[%s889_s30 + $0x8] sm:$0xff]  ;;  %v899_v7 = vld [vmem:[%s889_s30 + $0x10] sm:$0xf] }
 0x44a   : > { %v1370_v27 = vpop.permute.xlu2 %1369 }
 0x44b   : > { %v1391_v29 = vsel %vm985_vm1, %v1069_v28, %v1370_v27 }
 0x452   : > { %v1372_v35 = vpop.permute.xlu2 %1371 }
 0x453   : > { %v1392_v37 = vsel %vm985_vm1, %v1070_v36, %v1372_v35 }
 0x477   : > { %v1386_v30 = vpop.permute.xlu0 %1385 }
 0x48a   : > { %v1378_v31 = vpop.permute.xlu1 %1377 }
 0x48b   : > { %v1393_v32 = vsel %vm1019_vm2, %v1391_v29, %v1378_v31  ;;  %v2731_v31 = vld [vmem:[%s3741_s16] ss:$0 sm:$0xff] }
 0x48c   : > { %v1396_v33 = vsel %vm1395_vm3, %v1393_v32, %v1386_v30 }
 0x48d   : > { %2527 = vmatmul.msk.f32.vlgmr.msrb.gmra.mxu1 %vm912_vm0, %v1396_v33 }
 0x492   : > { %v1380_v38 = vpop.permute.xlu0 %1379  ;;  %v1388_v39 = vpop.permute.xlu1 %1387 }
 0x493   : > { %v1394_v56 = vsel %vm1019_vm2, %v1392_v37, %v1380_v38 }
 0x494   : > { %v1397_v40 = vsel %vm1395_vm3, %v1394_v56, %v1388_v39  ;;  %v1488_v39 = vperm.slane %v3478_v34, 0 }
 0x495   : > { %2528 = vmatmul.msk.f32.gmra.mxu1 %vm912_vm0, %v1397_v40 }
 0x50a   : > { %v1429_v42 = vpop.f32.mrf.mxu1 }
 0x50b   : > { %v1430_v43 = vadd.f32 %v2729_v41, %v1429_v42 }
 0x50d   : > { %v1435_v60 = vadd.f32 %v1430_v43, %v3309_v2  ;;  %v1496_v2 = vld [vmem:[%s3736_s11] sm:$0xf]  ;;  %v1491_v43 = vperm.slane %v3478_v34, 1 }
 0x50e   : > { %2529 = vmatpush.msk.msra.mxu2 %vm1508_vm4, %v1496_v2 }
 0x50f   : > { %v1437_v44 = vsel %vm912_vm0, %v1435_v60, 0.0  ;;  %2530 = vmatmul.msk.f32.vlgmr.msra.gmra.mxu2 %vm1501_vm5, %v1494_v46 }
 0x510   : > { %1438 = vadd.xlane.f32.xlu2 %v1437_v44 }
 0x512   : > { %v1432_v45 = vpop.f32.mrf.mxu1 }
 0x513   : > { %v1433_v47 = vadd.f32 %v2729_v41, %v1432_v45 }
 0x515   : > { %v1436_v48 = vadd.f32 %v1433_v47, %v3334_v11  ;;  %v1579_v11 = vld [vmem:[#allocation7 + $0x18] sm:$0xff] }
 0x516   : > { %1605 = vmatpush.msrb.mxu0 %v1579_v11 }
 0x517   : > { %v1440_v50 = vsel %vm912_vm0, %v1436_v48, 0.0  ;;  %2531 = vmatmul.msk.f32.gmra.mxu2 %vm1501_vm5, %v1495_v61  ;;  %vm2220_vm5 = vcmask 523264  }
 0x518   : > { %1441 = vadd.xlane.f32.xlu0 %v1440_v50  ;;  %1606 = vmatpush.msrb.mxu0 %v1578_v54 }
 0x51a   : > { %1607 = vmatpush.msrb.mxu0 %v1577_v57 }
 0x51c   : > { %1608 = vmatpush.msrb.mxu0 %v1576_v49 }
 0x51d   : > { %2534 = vmatmul.msk.f32.vlgmr.msrb.gmra.mxu0 %vm912_vm0, %v897_v59 }
 0x525   : > { %2535 = vmatmul.msk.f32.gmra.mxu0 %vm912_vm0, %v898_v0 }
 0x52d   : > { %2536 = vmatmul.msk.f32.gmra.mxu0 %vm912_vm0, %v899_v7 }
 0x583   : > { %v1439_v1 = vpop.xlane.xlu2 %1438 }
 0x584   : > { %v1450_v4 = vmul.f32 %v3458_v63, %v1439_v1  ;;  %v2732_v1 = vld [vmem:[%s3739_s14] ss:$0 sm:$0xff] }
 0x586   : > { %v1452_v5 = vsub.f32 %v1435_v60, %v1450_v4  ;;  %v2730_v60 = vld [vmem:[%s3737_s12] ss:$0 sm:$0xff] }
 0x588   : > { %v1454_v6 = vmul.f32 %v1452_v5, %v1452_v5 }
 0x58a   : > { %v1456_v8 = vsel %vm912_vm0, %v1454_v6, 0.0 }
 0x58b   : > { %1457 = vadd.xlane.f32.xlu1 %v1456_v8  ;;  %v1442_v9 = vpop.xlane.xlu0 %1441 }
 0x58c   : > { %v1451_v10 = vmul.f32 %v3458_v63, %v1442_v9 }
 0x58e   : > { %v3465_v13 = vsub.f32 %v1436_v48, %v1451_v10 }
 0x590   : > { %v1455_v14 = vmul.f32 %v3465_v13, %v3465_v13 }
 0x592   : > { %v1459_v15 = vsel %vm912_vm0, %v1455_v14, 0.0  ;;  %v1529_v41 = vpop.f32.mrf.mxu2 }
 0x593   : > { %1460 = vadd.xlane.f32.xlu2 %v1459_v15  ;;  %v1530_v53 = vadd.f32 %v2730_v60, %v1529_v41 }
 0x59a   : > { %v1610_v25 = vpop.f32.mrf.mxu0  ;;  %v1532_v57 = vpop.f32.mrf.mxu2 }
 0x59b   : > { %v1611_v50 = vadd.f32 %v2731_v31, %v1610_v25 }
 0x5a2   : > { %v1613_v32 = vpop.f32.mrf.mxu0 }
 0x5a3   : > { %v1614_v35 = vadd.f32 %v2731_v31, %v1613_v32 }
 0x5a5   : > { %v3500_v49 = vpack.i.bf16 %v1611_v50, %v1614_v35 }
 0x5aa   : > { %v1616_v47 = vpop.f32.mrf.mxu0 }
 0x5ab   : > { %1732 = vrot.lane.b32.xlu2 %v1614_v35, %s3052_s17  ;;  %v3486_v51 = vadd.f32 %v2731_v31, %v1616_v47 }
 0x5ad   : > { %1734 = vrot.lane.b32.xlu1 %v3486_v51, %s3052_s17  ;;  %1687 = vrot.lane.b32.xlu0 %v3486_v51, %s3049_s0 }
 0x5ae   : > { %2537 = vmatpush.xpose.msk.msra.mxu1 %vm985_vm1, %v3486_v51 }
 0x5b2   : > { %2538 = vmatpush.xpose.msk.msra.mxu1 %vm985_vm1, %v1614_v35 }
 0x5b3   : > { %1730 = vrot.lane.b32.xlu2 %v1611_v50, %s3052_s17 }
 0x5b5   : > { %2707 = vrot.lane.b32.xlu1 %v3500_v49, %s3049_s0  ;;  %s867_s0 = sand.u32 1, %s3815_s5  }
 0x5b6   : > { %2539 = vmatpush.xpose.msk.msra.mxu1 %vm985_vm1, %v1611_v50  ;;  %s2491_s7 = sshll.u32 %s867_s0, 4 }
 0x5bb   : > { %1842 = vrot.lane.b32.xlu2 %v3486_v51, %s3050_s13 }
 0x5bd   : > { %1950 = vrot.lane.b32.xlu1 %v3486_v51, %s3053_s26 }
 0x5c3   : > { %1948 = vrot.lane.b32.xlu2 %v1614_v35, %s3053_s26 }
 0x5c5   : > { %1840 = vrot.lane.b32.xlu1 %v1614_v35, %s3050_s13 }
 0x5cb   : > { %1946 = vrot.lane.b32.xlu2 %v1611_v50, %s3053_s26 }
 0x5fe   : > { %v1458_v20 = vpop.xlane.xlu1 %1457 }
 0x5ff   : > { %v1462_v21 = vmul.f32 %v1458_v20, %v3458_v63 }
 0x601   : > { %v1464_v22 = vadd.f32 1e-05, %v1462_v21 }
 0x603   : > { %2770 = vrsqrt.f32 %v1464_v22  ;;  %vm1472_vm8 = vweird.f32 %v1464_v22 }
 0x606   : > { %v1461_v23 = vpop.xlane.xlu2 %1460 }
 0x607   : > { %v1463_v24 = vmul.f32 %v1461_v23, %v3458_v63  ;;  %v3551_v23 = vld [vmem:[%s892_s15] ss:$0 sm:$0xff]  ;;  %s3811_s15 = smov 80  }
 0x609   : > { %v2771_v26 = vpop.eup %2770  ;;  %v1465_v27 = vadd.f32 1e-05, %v1463_v24 }
 0x60a   : > { %v1467_v28 = vmul.f32 %v2771_v26, %v1464_v22  ;;  %vm1473_vm7 = vweird.f32 %v2771_v26 }
 0x60b   : > { %2772 = vrsqrt.f32 %v1465_v27  ;;  %vm1474_vm9 = vmor %vm1472_vm8, %vm1473_vm7  ;;  %vm1482_vm11 = vweird.f32 %v1465_v27 }
 0x60c   : > { %v1468_v29 = vmul.f32 %v2771_v26, %v1467_v28 }
 0x60e   : > { %v1469_v30 = vmul.f32 0.5, %v1468_v29  ;;  %v1733_v0 = vpop.permute.xlu2 %1732 }
 0x610   : > { %v1470_v33 = vsub.f32 1.5, %v1469_v30 }
 0x611   : > { %v2773_v36 = vpop.eup %2772 }
 0x612   : > { %v1471_v37 = vmul.f32 %v2771_v26, %v1470_v33  ;;  %v1477_v38 = vmul.f32 %v2773_v36, %v1465_v27  ;;  %vm1483_vm10 = vweird.f32 %v2773_v36 }
 0x613   : > { %vm1484_vm12 = vmor %vm1482_vm11, %vm1483_vm10 }
 0x614   : > { %v1475_v56 = vsel %vm1474_vm9, %v2771_v26, %v1471_v37  ;;  %v1478_v40 = vmul.f32 %v2773_v36, %v1477_v38 }
 0x615   : > { %v1486_v42 = vmul.f32 %v1475_v56, %v1452_v5 }
 0x616   : > { %v1479_v44 = vmul.f32 0.5, %v1478_v40  ;;  %v1731_v5 = vpop.permute.xlu2 %1730 }
 0x617   : > { %v1489_v45 = vmul.f32 %v1488_v39, %v1486_v42 }
 0x618   : > { %v1480_v48 = vsub.f32 1.5, %v1479_v44 }
 0x619   : > { %v3488_v52 = vadd.f32 %v1491_v43, %v1489_v45 }
 0x61a   : > { %v1481_v2 = vmul.f32 %v2773_v36, %v1480_v48 }
 0x61b   : > { %v1535_v46 = vadd.f32 %v3488_v52, %v3311_v3  ;;  %v1533_v3 = vadd.f32 %v2730_v60, %v1532_v57 }
 0x61c   : > { %v1485_v11 = vsel %vm1484_vm12, %v2773_v36, %v1481_v2 }
 0x61d   : > { %v1487_v54 = vmul.f32 %v1485_v11, %v3465_v13  ;;  %v1537_v55 = vadd.f32 %v1535_v46, %v1530_v53 }
 0x61e   : > { %v1843_v9 = vpop.permute.xlu2 %1842 }
 0x61f   : > { %2532 = vmatmul.msk.f32.vlgmr.msrb.gmra.mxu3 %vm912_vm0, %v1537_v55  ;;  %v1490_v58 = vmul.f32 %v1488_v39, %v1487_v54  ;;  %v1735_v6 = vpop.permute.xlu1 %1734  ;;  %v1688_v14 = vpop.permute.xlu0 %1687 }
 0x620   : > { %2545 = vmatpush.xpose.msk.msra.mxu3 %vm985_vm1, %v1735_v6  ;;  %2542 = vmatpush.msk.msrb.mxu2 %vm1508_vm4, %v1688_v14 }
 0x621   : > { %v3504_v59 = vadd.f32 %v1491_v43, %v1490_v58 }
 0x623   : > { %v1536_v61 = vadd.f32 %v3504_v59, %v3336_v12 }
 0x624   : > { %2546 = vmatpush.xpose.msk.msra.mxu3 %vm985_vm1, %v1733_v0 }
 0x625   : > { %v1538_v62 = vadd.f32 %v1536_v61, %v1533_v3 }
 0x626   : > { %v1949_v16 = vpop.permute.xlu2 %1948 }
 0x627   : > { %2533 = vmatmul.msk.f32.gmra.mxu3 %vm912_vm0, %v1538_v62  ;;  %v2708_v10 = vpop.permute.xlu1 %2707 }
 0x628   : > { %v2709_v13 = vunpack.i.l.bf16 %v2708_v10  ;;  %2547 = vmatpush.xpose.msk.msra.mxu3 %vm985_vm1, %v1731_v5  ;;  %v2710_v15 = vunpack.i.h.bf16 %v2708_v10 }
 0x62a   : > { %1713 = vmatpush.msrb.mxu2 %v2709_v13 }
 0x62c   : > { %1714 = vmatpush.msrb.mxu2 %v2710_v15 }
 0x62e   : > { %2553 = vmatpush.xpose.msk.msra.mxu2 %vm985_vm1, %v1843_v9  ;;  %v1947_v18 = vpop.permute.xlu2 %1946 }
 0x62f   : > { %v1951_v17 = vpop.permute.xlu1 %1950 }
 0x630   : > { %2561 = vmatpush.xpose.msk.msrb.mxu3 %vm985_vm1, %v1951_v17 }
 0x634   : > { %2562 = vmatpush.xpose.msk.msrb.mxu3 %vm985_vm1, %v1949_v16 }
 0x637   : > { %v1841_v19 = vpop.permute.xlu1 %1840 }
 0x638   : > { %2563 = vmatpush.xpose.msk.msrb.mxu3 %vm985_vm1, %v1947_v18  ;;  %2554 = vmatpush.xpose.msk.msra.mxu2 %vm985_vm1, %v1841_v19 }
 0x6a2   : > { %v1570_v12 = vpop.f32.mrf.mxu3 }
 0x6a3   : > { %v1571_v4 = vadd.f32 %v2732_v1, %v1570_v12 }
 0x6a5   : > { %1726 = vrot.lane.b32.xlu1 %v1571_v4, %s3052_s17  ;;  %2540 = vmatmul.msk.f32.vlgmr.msra.gmra.mxu1 %vm985_vm1, %v1571_v4 }
 0x6aa   : > { %v1573_v7 = vpop.f32.mrf.mxu3 }
 0x6ab   : > { %v1574_v8 = vadd.f32 %v2732_v1, %v1573_v7 }
 0x6ad   : > { %1728 = vrot.lane.b32.xlu2 %v1574_v8, %s3052_s17  ;;  %1838 = vrot.lane.b32.xlu1 %v1611_v50, %s3050_s13  ;;  %s869_s17 = scalar_lea.vmem [#allocation11], %s2491_s7 }
 0x6ae   : > { %2541 = vmatmul.msk.f32.gmra.mxu1 %vm985_vm1, %v1574_v8  ;;  %s2317_s8 = sshll.u32 %s869_s17, 4  ;;  %s2318_s8 = int_to_ptr.vmem [resolvable:$true] %s2317_s8 }
 0x6b5   : > { %1942 = vrot.lane.b32.xlu2 %v1571_v4, %s3053_s26  ;;  %1834 = vrot.lane.b32.xlu1 %v1571_v4, %s3050_s13 }
 0x6bd   : > { %1944 = vrot.lane.b32.xlu1 %v1574_v8, %s3053_s26  ;;  %s2583_s26 = sshll.u32 %s3205_s6, 4  ;;  %s2305_s6 = scalar_lea.sflag [#allocation4], %s867_s0 }
 0x6c5   : > { %1795 = vrot.lane.b32.xlu1 %v3486_v51, %s3048_s29 }
 0x6cd   : > { %2712 = vrot.lane.b32.xlu1 %v3500_v49, %s3048_s29  ;;  %s3813_s29 = smov 16  }
 0x707   : > { %v1729_v21 = vpop.permute.xlu2 %1728 }
 0x70f   : > { %v1943_v27 = vpop.permute.xlu2 %1942 }
 0x717   : > { %v1727_v20 = vpop.permute.xlu1 %1726 }
 0x718   : > { %2548 = vmatmul.msk.f32.vlgmr.msra.gmra.mxu3 %vm985_vm1, %v1727_v20 }
 0x71f   : > { %v1839_v22 = vpop.permute.xlu1 %1838 }
 0x720   : > { %2549 = vmatmul.msk.f32.gmra.mxu3 %vm985_vm1, %v1729_v21  ;;  %2555 = vmatpush.xpose.msk.msra.mxu2 %vm985_vm1, %v1839_v22 }
 0x722   : > { %v1651_v24 = vpop.f32.mrf.mxu1 }
 0x723   : > { %v1657_v25 = vmul.f32 0.35355338, %v1651_v24 }
 0x725   : > { %v1662_v26 = vadd.f32 %v3551_v23, %v1657_v25 }
 0x727   : > { %v1835_v28 = vpop.permute.xlu1 %1834  ;;  %v1665_v29 = vsel %vm1664_vm13, %v1662_v26, -inf }
 0x728   : > { %1666 = vmax.xlane.f32.xlu0 %v1665_v29  ;;  %2564 = vmatmul.msk.f32.vlgmr.msrb.gmra.mxu3 %vm985_vm1, %v1943_v27 }
 0x72b   : > { %v1654_v30 = vpop.f32.mrf.mxu1 }
 0x72c   : > { %v1658_v31 = vmul.f32 0.35355338, %v1654_v30 }
 0x72e   : > { %v1663_v32 = vadd.f32 %v3551_v23, %v1658_v31 }
 0x72f   : > { %v1945_v33 = vpop.permute.xlu1 %1944 }
 0x730   : > { %v1668_v35 = vsel %vm1664_vm13, %v1663_v32, -inf  ;;  %2565 = vmatmul.msk.f32.gmra.mxu3 %vm985_vm1, %v1945_v33 }
 0x731   : > { %1669 = vmax.xlane.f32.xlu0 %v1668_v35 }
 0x737   : > { %v1796_v36 = vpop.permute.xlu1 %1795 }
 0x738   : > { %2550 = vmatpush.msk.msrb.mxu1 %vm1508_vm4, %v1796_v36 }
 0x73f   : > { %v2713_v37 = vpop.permute.xlu1 %2712 }
 0x740   : > { %v2714_v38 = vunpack.i.l.bf16 %v2713_v37  ;;  %v2715_v39 = vunpack.i.h.bf16 %v2713_v37 }
 0x742   : > { %1821 = vmatpush.msrb.mxu1 %v2714_v38 }
 0x744   : > { %1822 = vmatpush.msrb.mxu1 %v2715_v39 }
 0x745   : > { %1836 = vrot.lane.b32.xlu0 %v1574_v8, %s3050_s13  ;;  %s3814_s13 = smov 24  }
 0x74d   : > { %2011 = vrot.lane.b32.xlu0 %v3486_v51, %s3051_s25 }
 0x79b   : > { %v1667_v56 = vpop.xlane.xlu0 %1666  ;;  %v1763_v40 = vpop.f32.mrf.mxu3 }
 0x79c   : > { %v1671_v41 = vsub.f32 %v1662_v26, %v1667_v56  ;;  %v1769_v42 = vmul.f32 0.35355338, %v1763_v40 }
 0x79e   : > { %v1673_v43 = vmul.f32 1.442695, %v1671_v41  ;;  %v1771_v60 = vadd.f32 %v3551_v23, %v1769_v42 }
 0x7a0   : > { %2774 = vpow2.f32 %v1673_v43  ;;  %v1773_v44 = vsel %vm1664_vm13, %v1771_v60, -inf }
 0x7a1   : > { %1774 = vmax.xlane.f32.xlu2 %v1773_v44 }
 0x7a3   : > { %v1766_v45 = vpop.f32.mrf.mxu3 }
 0x7a4   : > { %v1670_v47 = vpop.xlane.xlu0 %1669  ;;  %v1770_v48 = vmul.f32 0.35355338, %v1766_v45 }
 0x7a5   : > { %v1672_v50 = vsub.f32 %v1663_v32, %v1670_v47 }
 0x7a6   : > { %v3565_v53 = vpop.eup %2774  ;;  %v1772_v2 = vadd.f32 %v3551_v23, %v1770_v48 }
 0x7a7   : > { %v1675_v46 = vmul.f32 1.442695, %v1672_v50  ;;  %2543 = vmatmul.msk.f32.vlgmr.msrb.gmra.mxu2 %vm1664_vm13, %v3565_v53  ;;  %v1677_v36 = vsel %vm1664_vm13, %v3565_v53, 0.0 }
 0x7a8   : > { %v1776_v11 = vsel %vm1664_vm13, %v1772_v2, -inf }
 0x7a9   : > { %2776 = vpow2.f32 %v1675_v46  ;;  %1777 = vmax.xlane.f32.xlu0 %v1776_v11 }
 0x7ab   : > { %v1979_v58 = vpop.f32.mrf.mxu3 }
 0x7ac   : > { %v1985_v3 = vmul.f32 0.35355338, %v1979_v58 }
 0x7ae   : > { %v1987_v61 = vadd.f32 %v3551_v23, %v1985_v3 }
 0x7af   : > { %v3571_v54 = vpop.eup %2776 }
 0x7b0   : > { %2544 = vmatmul.msk.f32.gmra.mxu2 %vm1664_vm13, %v3571_v54  ;;  %v1989_v1 = vsel %vm1664_vm13, %v1987_v61, -inf  ;;  %v1680_v46 = vsel %vm1664_vm13, %v3571_v54, 0.0 }
 0x7b3   : > { %v1982_v62 = vpop.f32.mrf.mxu3 }
 0x7b4   : > { %v1986_v0 = vmul.f32 0.35355338, %v1982_v62 }
 0x7b6   : > { %v1988_v12 = vadd.f32 %v3551_v23, %v1986_v0 }
 0x7b7   : > { %v1837_v55 = vpop.permute.xlu0 %1836 }
 0x7b8   : > { %2556 = vmatmul.msk.f32.vlgmr.msra.gmra.mxu2 %vm985_vm1, %v1835_v28  ;;  %v1992_v4 = vsel %vm1664_vm13, %v1988_v12, -inf }
 0x7b9   : > { %1903 = vrot.lane.b32.xlu2 %v3486_v51, %s3811_s15 }
 0x7bf   : > { %v2012_v57 = vpop.permute.xlu0 %2011 }
 0x7c0   : > { %2557 = vmatmul.msk.f32.gmra.mxu2 %vm985_vm1, %v1837_v55  ;;  %2566 = vmatpush.msk.msra.mxu1 %vm1508_vm4, %v2012_v57 }
 0x7e2   : > { %1990 = vmax.xlane.f32.xlu2 %v1989_v1 }
 0x7ea   : > { %1993 = vmax.xlane.f32.xlu2 %v1992_v4 }
 0x814   : > { %v1775_v51 = vpop.xlane.xlu2 %1774 }
 0x815   : > { %v1779_v5 = vsub.f32 %v1771_v60, %v1775_v51 }
 0x817   : > { %v1781_v6 = vmul.f32 1.442695, %v1779_v5 }
 0x819   : > { %2778 = vpow2.f32 %v1781_v6 }
 0x81c   : > { %v1904_v7 = vpop.permute.xlu2 %1903  ;;  %v1778_v8 = vpop.xlane.xlu0 %1777 }
 0x81d   : > { %v1780_v9 = vsub.f32 %v1772_v2, %v1778_v8  ;;  %2558 = vmatpush.msk.msra.mxu0 %vm1508_vm4, %v1904_v7 }
 0x81f   : > { %v2779_v10 = vpop.eup %2778  ;;  %v1783_v13 = vmul.f32 1.442695, %v1780_v9 }
 0x820   : > { %2551 = vmatmul.msk.f32.vlgmr.msrb.gmra.mxu1 %vm1664_vm13, %v2779_v10  ;;  %v1785_v35 = vsel %vm1664_vm13, %v2779_v10, 0.0 }
 0x821   : > { %2780 = vpow2.f32 %v1783_v13 }
 0x827   : > { %v2781_v14 = vpop.eup %2780 }
 0x828   : > { %2552 = vmatmul.msk.f32.gmra.mxu1 %vm1664_vm13, %v2781_v14  ;;  %v1788_v31 = vsel %vm1664_vm13, %v2781_v14, 0.0 }
 0x82a   : > { %v3587_v15 = vpop.f32.mrf.mxu2 }
 0x833   : > { %v3589_v16 = vpop.f32.mrf.mxu2 }
 0x83b   : > { %v1871_v17 = vpop.f32.mrf.mxu2 }
 0x83c   : > { %v1877_v18 = vmul.f32 0.35355338, %v1871_v17 }
 0x83e   : > { %v1879_v19 = vadd.f32 %v3551_v23, %v1877_v18 }
 0x840   : > { %v1881_v20 = vsel %vm1664_vm13, %v1879_v19, -inf }
 0x841   : > { %1882 = vmax.xlane.f32.xlu1 %v1881_v20 }
 0x843   : > { %v1874_v21 = vpop.f32.mrf.mxu2 }
 0x844   : > { %v1878_v22 = vmul.f32 0.35355338, %v1874_v21 }
 0x846   : > { %v1880_v24 = vadd.f32 %v3551_v23, %v1878_v22  ;;  %v2083_v22 = vld [vmem:[#allocation8 + $0x18] sm:$0xff] }
 0x847   : > { %2106 = vmatpush.msrb.mxu2 %v2083_v22 }
 0x848   : > { %v1884_v25 = vsel %vm1664_vm13, %v1880_v24, -inf }
 0x849   : > { %1885 = vmax.xlane.f32.xlu0 %v1884_v25  ;;  %v2081_v25 = vld [vmem:[#allocation8 + $0x8] sm:$0xff] }
 0x855   : > { %v1991_v26 = vpop.xlane.xlu2 %1990 }
 0x856   : > { %v1995_v27 = vsub.f32 %v1987_v61, %v1991_v26  ;;  %v2080_v26 = vld [vmem:[#allocation8] sm:$0xff] }
 0x858   : > { %v1997_v28 = vmul.f32 1.442695, %v1995_v27 }
 0x85a   : > { %2782 = vpow2.f32 %v1997_v28  ;;  %2717 = vrot.lane.b32.xlu1 %v3500_v49, %s3811_s15 }
 0x85d   : > { %2722 = vrot.lane.b32.xlu0 %v3500_v49, %s3051_s25  ;;  %v1994_v23 = vpop.xlane.xlu2 %1993 }
 0x85e   : > { %v1996_v32 = vsub.f32 %v1988_v12, %v1994_v23 }
 0x860   : > { %v2783_v29 = vpop.eup %2782  ;;  %v1999_v33 = vmul.f32 1.442695, %v1996_v32 }
 0x861   : > { %v2001_v30 = vsel %vm1664_vm13, %v2783_v29, 0.0 }
 0x862   : > { %2002 = vadd.xlane.f32.xlu2 %v2001_v30  ;;  %2784 = vpow2.f32 %v1999_v33 }
 0x868   : > { %v2785_v37 = vpop.eup %2784 }
 0x869   : > { %v2004_v49 = vsel %vm1664_vm13, %v2785_v37, 0.0 }
 0x86a   : > { %1789 = vadd.xlane.f32.xlu2 %v1788_v31 }
 0x884   : > { %1786 = vadd.xlane.f32.xlu1 %v1785_v35 }
 0x887   : > { %1678 = vadd.xlane.f32.xlu0 %v1677_v36 }
 0x88c   : > { %2005 = vadd.xlane.f32.xlu1 %v2004_v49 }
 0x89d   : > { %v1824_v58 = vpop.f32.mrf.mxu1 }
 0x8a5   : > { %v1827_v1 = vpop.f32.mrf.mxu1 }
 0x8b4   : > { %v1883_v38 = vpop.xlane.xlu1 %1882 }
 0x8b5   : > { %v1887_v39 = vsub.f32 %v1879_v19, %v1883_v38 }
 0x8b7   : > { %v1889_v56 = vmul.f32 1.442695, %v1887_v39 }
 0x8b9   : > { %2786 = vpow2.f32 %v1889_v56 }
 0x8bc   : > { %v1886_v40 = vpop.xlane.xlu0 %1885 }
 0x8bd   : > { %v1888_v41 = vsub.f32 %v1880_v24, %v1886_v40  ;;  %v2082_v24 = vld [vmem:[#allocation8 + $0x10] sm:$0xff] }
 0x8be   : > { %2107 = vmatpush.msrb.mxu2 %v2082_v24 }
 0x8bf   : > { %v2787_v42 = vpop.eup %2786  ;;  %v1891_v43 = vmul.f32 1.442695, %v1888_v41  ;;  %v2733_v41 = vld [vmem:[%s3743_s18] ss:$0 sm:$0xff] }
 0x8c0   : > { %v1893_v60 = vsel %vm1664_vm13, %v2787_v42, 0.0  ;;  %2108 = vmatpush.msrb.mxu2 %v2081_v25  ;;  %v2166_v25 = vperm.slane %v3478_v34, 3 }
 0x8c1   : > { %2788 = vpow2.f32 %v1891_v43  ;;  %1894 = vadd.xlane.f32.xlu0 %v1893_v60 }
 0x8c2   : > { %2109 = vmatpush.msrb.mxu2 %v2080_v26 }
 0x8c7   : > { %v2789_v44 = vpop.eup %2788 }
 0x8c8   : > { %v1896_v45 = vsel %vm1664_vm13, %v2789_v44, 0.0 }
 0x8c9   : > { %1897 = vadd.xlane.f32.xlu2 %v1896_v45 }
 0x8cc   : > { %v2718_v47 = vpop.permute.xlu1 %2717 }
 0x8cd   : > { %v2719_v48 = vunpack.i.l.bf16 %v2718_v47  ;;  %v2720_v50 = vunpack.i.h.bf16 %v2718_v47 }
 0x8cf   : > { %1929 = vmatpush.msra.mxu0 %v2719_v48  ;;  %v2723_v53 = vpop.permute.xlu0 %2722 }
 0x8d0   : > { %v2724_v2 = vunpack.i.l.bf16 %v2723_v53  ;;  %v2725_v11 = vunpack.i.h.bf16 %v2723_v53 }
 0x8d1   : > { %1930 = vmatpush.msra.mxu0 %v2720_v50  ;;  %1681 = vadd.xlane.f32.xlu2 %v1680_v46 }
 0x8d2   : > { %2559 = vmatmul.msk.f32.vlgmr.msra.gmra.mxu0 %vm1664_vm13, %v2787_v42  ;;  %2037 = vmatpush.msra.mxu1 %v2724_v2 }
 0x8d4   : > { %2038 = vmatpush.msra.mxu1 %v2725_v11 }
 0x8d5   : > { %2567 = vmatmul.msk.f32.vlgmr.msra.gmra.mxu1 %vm1664_vm13, %v2783_v29  ;;  %v2003_v54 = vpop.xlane.xlu2 %2002 }
 0x8da   : > { %2560 = vmatmul.msk.f32.gmra.mxu0 %vm1664_vm13, %v2789_v44 }
 0x8dd   : > { %2568 = vmatmul.msk.f32.gmra.mxu1 %vm1664_vm13, %v2785_v37  ;;  %v1790_v62 = vpop.xlane.xlu2 %1789 }
 0x8f7   : > { %v1787_v55 = vpop.xlane.xlu1 %1786 }
 0x8f8   : > { %2790 = vrcp.f32 %v1787_v55 }
 0x8fa   : > { %v1679_v61 = vpop.xlane.xlu0 %1678 }
 0x8fe   : > { %v2791_v57 = vpop.eup %2790 }
 0x8ff   : > { %v1832_v3 = vmul.f32 %v2791_v57, %v1824_v58  ;;  %v2006_v10 = vpop.xlane.xlu1 %2005 }
 0x901   : > { %2052 = vrot.lane.b32.xlu1 %v1832_v3, %s3812_s24 }
 0x934   : > { %v1895_v0 = vpop.xlane.xlu0 %1894 }
 0x935   : > { %2792 = vrcp.f32 %v1895_v0 }
 0x936   : > { %2794 = vrcp.f32 %v2003_v54  ;;  %v2171_v54 = vld [vmem:[#allocation10 + $0x10] sm:$0xff] }
 0x937   : > { %2796 = vrcp.f32 %v1790_v62  ;;  %v2169_v62 = vld [vmem:[#allocation10] sm:$0xff] }
 0x93b   : > { %v2793_v4 = vpop.eup %2792 }
 0x93c   : > { %v1898_v12 = vpop.xlane.xlu2 %1897  ;;  %v2795_v6 = vpop.eup %2794 }
 0x93d   : > { %2798 = vrcp.f32 %v1898_v12  ;;  %v2797_v9 = vpop.eup %2796 }
 0x93e   : > { %v1833_v18 = vmul.f32 %v2797_v9, %v1827_v1  ;;  %2800 = vrcp.f32 %v2006_v10 }
 0x93f   : > { %2802 = vrcp.f32 %v1679_v61  ;;  %v2170_v61 = vld [vmem:[#allocation10 + $0x8] sm:$0xff] }
 0x943   : > { %v2799_v13 = vpop.eup %2798 }
 0x944   : > { %v2801_v20 = vpop.eup %2800  ;;  %v1682_v27 = vpop.xlane.xlu2 %1681 }
 0x945   : > { %v2803_v28 = vpop.eup %2802  ;;  %2804 = vrcp.f32 %v1682_v27 }
 0x946   : > { %v1724_v30 = vmul.f32 %v2803_v28, %v3587_v15 }
 0x94b   : > { %v2805_v36 = vpop.eup %2804 }
 0x94c   : > { %v1725_v49 = vmul.f32 %v2805_v36, %v3589_v16 }
 0x94f   : > { %v1932_v51 = vpop.f32.mrf.mxu0 }
 0x950   : > { %v1940_v5 = vmul.f32 %v2793_v4, %v1932_v51 }
 0x952   : > { %2060 = vrot.lane.b32.xlu0 %v1940_v5, %s3813_s29  ;;  %v2040_v7 = vpop.f32.mrf.mxu1  ;;  %v2215_v5 = vld [vmem:[%s3746_s21 + $0x38] sm:$0xff] }
 0x953   : > { %v2048_v8 = vmul.f32 %v2795_v6, %v2040_v7  ;;  %v2214_v6 = vld [vmem:[%s3746_s21 + $0x30] sm:$0xff]  ;;  %2235 = vmatpush.msra.mxu3 %v2215_v5 }
 0x955   : > { %2068 = vrot.lane.b32.xlu2 %v2048_v8, %s3814_s13  ;;  %v2213_v8 = vld [vmem:[%s3746_s21 + $0x28] sm:$0xff]  ;;  %2236 = vmatpush.msra.mxu3 %v2214_v6 }
 0x957   : > { %v1935_v14 = vpop.f32.mrf.mxu0  ;;  %2237 = vmatpush.msra.mxu3 %v2213_v8 }
 0x958   : > { %v1941_v17 = vmul.f32 %v2799_v13, %v1935_v14  ;;  %v2212_v14 = vld [vmem:[%s3746_s21 + $0x20] sm:$0xff] }
 0x959   : > { %2238 = vmatpush.msra.mxu3 %v2212_v14  ;;  %v2296_v14 = vperm.slane %v3478_v34, 4 }
 0x95a   : > { %2062 = vrot.lane.b32.xlu1 %v1941_v17, %s3813_s29  ;;  %2054 = vrot.lane.b32.xlu0 %v1833_v18, %s3812_s24  ;;  %v2043_v19 = vpop.f32.mrf.mxu1 }
 0x95b   : > { %v2049_v21 = vmul.f32 %v2801_v20, %v2043_v19  ;;  %v2211_v19 = vld [vmem:[%s3746_s21 + $0x18] sm:$0xff] }
 0x95c   : > { %2239 = vmatpush.msra.mxu3 %v2211_v19 }
 0x962   : > { %2070 = vrot.lane.b32.xlu0 %v2049_v21, %s3814_s13  ;;  %v2163_v21 = vperm.slane %v3478_v34, 2  ;;  %s3816_s13 = sld [smem:[#allocation37_spill]] }
 0x968   : > { %s2316_s30 = scalar_lea.hbm %s3816_s13, %s2583_s26  ;;  %s2984_s26 = scalar_lea.hbm %s3816_s13, 32 }
 0x969   : > { %s2319_s27 = sshll.u32 %s2316_s30, 4  ;;  %s2320_s27 = int_to_ptr.hbm [resolvable:$true] %s2319_s27 }
 0x96a   : > { %s2978_s3 = sshra.s32 %s2320_s27, 4  ;;  %s2979_s3 = int_to_ptr.hbm [resolvable:$true] %s2978_s3 }
 0x96b   : > { %s2980_s4 = scalar_lea.hbm %s2979_s3, 16  ;;  %p2985_p3 = scmp.lt.s32.totalorder %s2979_s3, %s3816_s13 }
 0x96c   : > { %p2981_p0 = scmp.ne.s32.totalorder %s2979_s3, %s2980_s4  ;;  %p2986_p4 = scmp.lt.s32.totalorder %s2984_s26, %s2980_s4 }
 0x96e   : > { %p2982_p1 = pnand %p2981_p0, %p3222_p5  ;;  %p2987_p7 = por %p2986_p4, %p2985_p3 }
 0x970   : > { %p2983_p2 = pneg %p2982_p1 }
 0x972   : > { %p2988_p8 = pnand %p2987_p7, %p2983_p2 }
 0x973   : > { %v2053_v29 = vpop.permute.xlu1 %2052 }
 0x974   : > { %v2074_v31 = vsel %vm985_vm1, %v1724_v30, %v2053_v29 }
 0x9af   : > { %v2069_v32 = vpop.permute.xlu2 %2068 }
 0x9c4   : > { %v2061_v23 = vpop.permute.xlu0 %2060 }
 0x9c5   : > { %v2076_v33 = vsel %vm1019_vm2, %v2074_v31, %v2061_v23 }
 0x9c6   : > { %v2078_v35 = vsel %vm1395_vm3, %v2076_v33, %v2069_v32 }
 0x9c7   : > { %2569 = vmatmul.msk.f32.vlgmr.msrb.gmra.mxu2 %vm912_vm0, %v2078_v35 }
 0x9cc   : > { %v2055_v37 = vpop.permute.xlu0 %2054  ;;  %v2063_v38 = vpop.permute.xlu1 %2062 }
 0x9cd   : > { %v2075_v39 = vsel %vm985_vm1, %v1725_v49, %v2055_v37  ;;  %v2210_v49 = vld [vmem:[%s3746_s21 + $0x10] sm:$0xff] }
 0x9ce   : > { %v2077_v15 = vsel %vm1019_vm2, %v2075_v39, %v2063_v38  ;;  %2240 = vmatpush.msra.mxu3 %v2210_v49  ;;  %v2209_v38 = vld [vmem:[%s3746_s21 + $0x8] sm:$0xff]  ;;  %v2208_v39 = vld [vmem:[%s3746_s21] sm:$0xff] }
 0x9d0   : > { %2241 = vmatpush.msra.mxu3 %v2209_v38 }
 0x9d2   : > { %2242 = vmatpush.msra.mxu3 %v2208_v39 }
 0x9d4   : > { %v2071_v56 = vpop.permute.xlu0 %2070 }
 0x9d5   : > { %v2079_v40 = vsel %vm1395_vm3, %v2077_v15, %v2071_v56  ;;  %v2734_v56 = vld [vmem:[%s3745_s20] ss:$0 sm:$0xff] }
 0x9d6   : > { %2570 = vmatmul.msk.f32.gmra.mxu2 %vm912_vm0, %v2079_v40 }
 0xa4a   : > { %v2111_v42 = vpop.f32.mrf.mxu2 }
 0xa4b   : > { %v2112_v43 = vadd.f32 %v2733_v41, %v2111_v42 }
 0xa4d   : > { %v2117_v60 = vadd.f32 %v2112_v43, %v3488_v52 }
 0xa4f   : > { %v2119_v16 = vsel %vm912_vm0, %v2117_v60, 0.0 }
 0xa50   : > { %2120 = vadd.xlane.f32.xlu2 %v2119_v16  ;;  %v2735_v16 = vld [vmem:[%s3747_s22] ss:$0 sm:$0xff] }
 0xa59   : > { %v2114_v44 = vpop.f32.mrf.mxu2 }
 0xa5a   : > { %v2115_v45 = vadd.f32 %v2733_v41, %v2114_v44 }
 0xa5c   : > { %v2118_v47 = vadd.f32 %v2115_v45, %v3504_v59  ;;  %v2172_v59 = vld [vmem:[#allocation10 + $0x18] sm:$0xff] }
 0xa5d   : > { %2195 = vmatpush.msrb.mxu0 %v2172_v59 }
 0xa5e   : > { %v2122_v48 = vsel %vm912_vm0, %v2118_v47, 0.0 }
 0xa5f   : > { %2123 = vadd.xlane.f32.xlu1 %v2122_v48  ;;  %2196 = vmatpush.msrb.mxu0 %v2171_v54 }
 0xa61   : > { %2197 = vmatpush.msrb.mxu0 %v2170_v61 }
 0xa63   : > { %2198 = vmatpush.msrb.mxu0 %v2169_v62 }
 0xac3   : > { %v2121_v50 = vpop.xlane.xlu2 %2120 }
 0xac4   : > { %v2125_v53 = vmul.f32 %v2121_v50, %v3458_v63 }
 0xac6   : > { %v2127_v2 = vsub.f32 %v2117_v60, %v2125_v53 }
 0xac8   : > { %v2129_v46 = vmul.f32 %v2127_v2, %v2127_v2 }
 0xaca   : > { %v2131_v11 = vsel %vm912_vm0, %v2129_v46, 0.0 }
 0xacb   : > { %2132 = vadd.xlane.f32.xlu0 %v2131_v11 }
 0xad2   : > { %v2124_v55 = vpop.xlane.xlu1 %2123 }
 0xad3   : > { %v2126_v52 = vmul.f32 %v2124_v55, %v3458_v63 }
 0xad5   : > { %v2128_v57 = vsub.f32 %v2118_v47, %v2126_v52 }
 0xad7   : > { %v2130_v58 = vmul.f32 %v2128_v57, %v2128_v57 }
 0xad9   : > { %v2134_v3 = vsel %vm912_vm0, %v2130_v58, 0.0 }
 0xada   : > { %2135 = vadd.xlane.f32.xlu2 %v2134_v3 }
 0xb3e   : > { %v2133_v0 = vpop.xlane.xlu0 %2132 }
 0xb3f   : > { %v2137_v1 = vmul.f32 %v2133_v0, %v3458_v63 }
 0xb41   : > { %v2139_v12 = vadd.f32 1e-05, %v2137_v1 }
 0xb43   : > { %2806 = vrsqrt.f32 %v2139_v12  ;;  %vm2147_vm15 = vweird.f32 %v2139_v12 }
 0xb49   : > { %v2807_v4 = vpop.eup %2806 }
 0xb4a   : > { %v2142_v51 = vmul.f32 %v2807_v4, %v2139_v12  ;;  %vm2148_vm14 = vweird.f32 %v2807_v4 }
 0xb4b   : > { %vm2149_vm1 = vmor %vm2147_vm15, %vm2148_vm14 }
 0xb4c   : > { %v2143_v7 = vmul.f32 %v2807_v4, %v2142_v51 }
 0xb4d   : > { %v2136_v9 = vpop.xlane.xlu2 %2135 }
 0xb4e   : > { %v2144_v10 = vmul.f32 0.5, %v2143_v7  ;;  %v2138_v13 = vmul.f32 %v2136_v9, %v3458_v63 }
 0xb50   : > { %v2145_v17 = vsub.f32 1.5, %v2144_v10  ;;  %v2140_v18 = vadd.f32 1e-05, %v2138_v13 }
 0xb52   : > { %v2146_v20 = vmul.f32 %v2807_v4, %v2145_v17  ;;  %2808 = vrsqrt.f32 %v2140_v18  ;;  %vm2157_vm3 = vweird.f32 %v2140_v18 }
 0xb54   : > { %v2150_v22 = vsel %vm2149_vm1, %v2807_v4, %v2146_v20 }
 0xb55   : > { %v2161_v24 = vmul.f32 %v2150_v22, %v2127_v2 }
 0xb57   : > { %v2164_v26 = vmul.f32 %v2163_v21, %v2161_v24 }
 0xb58   : > { %v2809_v27 = vpop.eup %2808 }
 0xb59   : > { %v2152_v28 = vmul.f32 %v2809_v27, %v2140_v18  ;;  %v2167_v29 = vadd.f32 %v2166_v25, %v2164_v26  ;;  %vm2158_vm2 = vweird.f32 %v2809_v27  ;;  %v2299_v18 = vperm.slane %v3478_v34, 5 }
 0xb5a   : > { %vm2159_vm4 = vmor %vm2157_vm3, %vm2158_vm2 }
 0xb5b   : > { %v2153_v30 = vmul.f32 %v2809_v27, %v2152_v28  ;;  %2571 = vmatmul.msk.f32.vlgmr.msrb.gmra.mxu0 %vm912_vm0, %v2167_v29 }
 0xb5d   : > { %v2154_v31 = vmul.f32 0.5, %v2153_v30 }
 0xb5f   : > { %v2155_v23 = vsub.f32 1.5, %v2154_v31 }
 0xb61   : > { %v2156_v32 = vmul.f32 %v2809_v27, %v2155_v23 }
 0xb63   : > { %v2160_v33 = vsel %vm2159_vm4, %v2809_v27, %v2156_v32 }
 0xb64   : > { %v2162_v35 = vmul.f32 %v2160_v33, %v2128_v57 }
 0xb66   : > { %v2165_v36 = vmul.f32 %v2163_v21, %v2162_v35 }
 0xb68   : > { %v2168_v37 = vadd.f32 %v2166_v25, %v2165_v36 }
 0xb6a   : > { %2572 = vmatmul.msk.f32.gmra.mxu0 %vm912_vm0, %v2168_v37 }
 0xbd8   : > { %v2200_v15 = vpop.f32.mrf.mxu0 }
 0xbd9   : > { %v2201_v40 = vadd.f32 %v2734_v56, %v2200_v15 }
 0xbdb   : > { %v2206_v41 = vmax.f32 %v2201_v40, 0.0 }
 0xbdd   : > { %2573 = vmatmul.msk.f32.vlgmr.msra.gmra.mxu3 %vm2220_vm5, %v2206_v41 }
 0xbe7   : > { %v2203_v42 = vpop.f32.mrf.mxu0 }
 0xbe8   : > { %v2204_v43 = vadd.f32 %v2734_v56, %v2203_v42 }
 0xbea   : > { %v2207_v60 = vmax.f32 %v2204_v43, 0.0 }
 0xbec   : > { %2574 = vmatmul.msk.f32.gmra.mxu3 %vm2220_vm5, %v2207_v60 }
 0xc60   : > { %v2244_v44 = vpop.f32.mrf.mxu3 }
 0xc61   : > { %v2245_v45 = vadd.f32 %v2735_v16, %v2244_v44 }
 0xc63   : > { %v2250_v47 = vadd.f32 %v2245_v45, %v2167_v29 }
 0xc65   : > { %v2252_v48 = vsel %vm912_vm0, %v2250_v47, 0.0 }
 0xc66   : > { %2253 = vadd.xlane.f32.xlu1 %v2252_v48 }
 0xc6f   : > { %v2247_v50 = vpop.f32.mrf.mxu3 }
 0xc70   : > { %v2248_v53 = vadd.f32 %v2735_v16, %v2247_v50 }
 0xc72   : > { %v2251_v2 = vadd.f32 %v2248_v53, %v2168_v37 }
 0xc74   : > { %v2255_v46 = vsel %vm912_vm0, %v2251_v2, 0.0 }
 0xc75   : > { %2256 = vadd.xlane.f32.xlu2 %v2255_v46 }
 0xcd9   : > { %v2254_v11 = vpop.xlane.xlu1 %2253 }
 0xcda   : > { %v2258_v55 = vmul.f32 %v2254_v11, %v3458_v63 }
 0xcdc   : > { %v2260_v52 = vsub.f32 %v2250_v47, %v2258_v55 }
 0xcde   : > { %v2262_v57 = vmul.f32 %v2260_v52, %v2260_v52 }
 0xce0   : > { %v2264_v58 = vsel %vm912_vm0, %v2262_v57, 0.0 }
 0xce1   : > { %2265 = vadd.xlane.f32.xlu0 %v2264_v58 }
 0xce8   : > { %v2257_v3 = vpop.xlane.xlu2 %2256 }
 0xce9   : > { %v2259_v59 = vmul.f32 %v2257_v3, %v3458_v63 }
 0xceb   : > { %v2261_v54 = vsub.f32 %v2251_v2, %v2259_v59 }
 0xced   : > { %v2263_v61 = vmul.f32 %v2261_v54, %v2261_v54 }
 0xcef   : > { %v2267_v62 = vsel %vm912_vm0, %v2263_v61, 0.0 }
 0xcf0   : > { %2268 = vadd.xlane.f32.xlu1 %v2267_v62 }
 0xd54   : > { %v2266_v0 = vpop.xlane.xlu0 %2265 }
 0xd55   : > { %v2270_v1 = vmul.f32 %v2266_v0, %v3458_v63 }
 0xd57   : > { %v2272_v12 = vadd.f32 1e-05, %v2270_v1 }
 0xd59   : > { %2810 = vrsqrt.f32 %v2272_v12  ;;  %vm2280_vm7 = vweird.f32 %v2272_v12 }
 0xd5f   : > { %v2811_v4 = vpop.eup %2810 }
 0xd60   : > { %v2275_v51 = vmul.f32 %v2811_v4, %v2272_v12  ;;  %vm2281_vm6 = vweird.f32 %v2811_v4 }
 0xd61   : > { %vm2282_vm8 = vmor %vm2280_vm7, %vm2281_vm6 }
 0xd62   : > { %v2276_v5 = vmul.f32 %v2811_v4, %v2275_v51 }
 0xd63   : > { %v2269_v6 = vpop.xlane.xlu1 %2268 }
 0xd64   : > { %v2277_v7 = vmul.f32 0.5, %v2276_v5  ;;  %v2271_v8 = vmul.f32 %v2269_v6, %v3458_v63 }
 0xd66   : > { %v2278_v9 = vsub.f32 1.5, %v2277_v7  ;;  %v2273_v10 = vadd.f32 1e-05, %v2271_v8 }
 0xd68   : > { %v2279_v13 = vmul.f32 %v2811_v4, %v2278_v9  ;;  %2812 = vrsqrt.f32 %v2273_v10  ;;  %vm2290_vm10 = vweird.f32 %v2273_v10 }
 0xd6a   : > { %v2283_v17 = vsel %vm2282_vm8, %v2811_v4, %v2279_v13 }
 0xd6b   : > { %v2294_v19 = vmul.f32 %v2283_v17, %v2260_v52 }
 0xd6d   : > { %v2297_v20 = vmul.f32 %v2296_v14, %v2294_v19 }
 0xd6e   : > { %v2813_v21 = vpop.eup %2812 }
 0xd6f   : > { %v2300_v63 = vadd.f32 %v2299_v18, %v2297_v20  ;;  %v2285_v22 = vmul.f32 %v2813_v21, %v2273_v10  ;;  %vm2291_vm9 = vweird.f32 %v2813_v21 }
 0xd70   : > { %vm2292_vm11 = vmor %vm2290_vm10, %vm2291_vm9 }
 0xd71   : > { %v2286_v24 = vmul.f32 %v2813_v21, %v2285_v22  ;;  %2302 = vst.msk [vmem:[%s869_s17] sm:$0xff] %vm912_vm0, %v2300_v63 }
 0xd73   : > { %v2287_v25 = vmul.f32 0.5, %v2286_v24 }
 0xd75   : > { %v2288_v26 = vsub.f32 1.5, %v2287_v25 }
 0xd77   : > { %v2289_v27 = vmul.f32 %v2813_v21, %v2288_v26 }
 0xd79   : > { %v2293_v34 = vsel %vm2292_vm11, %v2813_v21, %v2289_v27 }
 0xd7a   : > { %v2295_v28 = vmul.f32 %v2293_v34, %v2261_v54 }
 0xd7c   : > { %v2298_v29 = vmul.f32 %v2296_v14, %v2295_v28 }
 0xd7e   : > { %v2301_v30 = vadd.f32 %v2299_v18, %v2298_v29 }
 0xd80   : > { %2303 = vst.msk [vmem:[%s869_s17 + $0x8] sm:$0xff] %vm912_vm0, %v2301_v30 }
 0xd81   : > { %2991 = shalt.err (!%p2988_p8)
}
 0xd82   : > { %s3058_s5 = smov 128  }
 0xd83   : > { %2607 = dma.vmem_to_hbm [thread:$0]  (%p3222_p5), %s2318_s8, 256, %s2320_s27, %s2305_s6, %s3058_s5, %s3058_s5, %s3812_s24  }
 0xd84 PF: > { %s3818_s0 = sld [smem:[#allocation19_spill]] }
 0xd85   : > { %s3819_s17 = sld [smem:[#allocation16_spill]] }
 0xd8a   : > { %p2639_p9 = scmp.ge.s32.totalorder %s3818_s0, 2 }
 0xd8b   : > { %s2334_s28 = sand.u32 1, %s3819_s17  }
 0xd8c   : > { %p2626_p10 = pnand %p2639_p9, %p3226_p6  ;;  %s2335_s7 = scalar_lea.sflag [#allocation4], %s2334_s28 }
 0xd8e   : > { %p2627_p11 = pneg %p2626_p10 }
 0xd90   : > { %3021 = dma.done.wait (%p2627_p11), %s2335_s7, 256  }
 0xd91   : > { %3023 = vsyncadd (%p2627_p11), %s2335_s7, 4294967040  ;;  %s3821_s28 = sld [smem:[#allocation20_spill]] }
 0xd92   : > { %s3822_s5 = sld [smem:[#allocation17_spill]] }
 0xd93   : > { %s3823_s26 = sld [smem:[#allocation18_spill]] }
 0xd94   : > { %s3824_s27 = sld [smem:[#allocation21_spill]] }
 0xd97   : > { %p37_p12 = scmp.ge.s32.totalorder %s3821_s28, 4  }
 0xd99   :  { %39 = sbr.rel (!%p37_p12) target bundleno = 21 (0x15), region = 184 }
 0xd9e   :  { %2341 = vsyncpa [#allocation3], 1 }
 0xd9f   :  { %2343 = vsyncpa [#allocation3 + $0x1], 1 }
 0xda0   :  { %2344 = vsyncpa [#allocation6], 1 }
 0xda1   :  { %2345 = vsyncpa [#allocation9], 1 }
 0xda2   :  { %2346 = vsyncpa [#allocation4], 1 }
 0xda3   :  { %2348 = vsyncpa [#allocation4 + $0x1], 1 }

</bundles_post_ra>
